<compile_context>
chip_gen: v6e
topology: v6e:2x2x1
jax: 0.10.0
libtpu: 0.0.40
codegen_flags: <defaults>
</compile_context>

<pallas_src>
import functools

import jax
import jax.numpy as jnp
from jax.experimental import pallas as pl
from jax.experimental.pallas import tpu as pltpu


def _round_up(x, m):
    return ((x + m - 1) // m) * m


def pma_kernel(seeds_ref, z_ref, wq_ref, bq_ref, wk_ref, bk_ref, wv_ref, bv_ref,
               gamma_ref, beta_ref, o_ref,
               q_cache, m_sc, l_sc, acc_sc, *,
               h, p, tile_n, n_true, masked, scale, eps, compute_dtype):
    j = pl.program_id(1)
    last_j = pl.num_programs(1) - 1

    # ---- once per batch: project the seed queries, cache per-head, reset state
    @pl.when(j == 0)
    def _project_queries_and_reset():
        s = seeds_ref[0].astype(compute_dtype)                      # [k, d]
        q = jnp.dot(s, wq_ref[...],
                    preferred_element_type=jnp.float32) + bq_ref[...]
        q = q.astype(compute_dtype)
        for head in range(h):
            q_cache[head] = q[:, head * p:(head + 1) * p]           # [k, p]
        m_sc[...] = jnp.full_like(m_sc, -1e30)
        l_sc[...] = jnp.zeros_like(l_sc)
        acc_sc[...] = jnp.zeros_like(acc_sc)

    # ---- project this tile of keys/values (fused; stays in VMEM) -----------
    zt = z_ref[0]                                                   # [tn, d] bf16
    k_t = (jnp.dot(zt, wk_ref[...], preferred_element_type=jnp.float32)
           + bk_ref[...]).astype(compute_dtype)                     # [tn, d]
    v_t = (jnp.dot(zt, wv_ref[...], preferred_element_type=jnp.float32)
           + bv_ref[...]).astype(compute_dtype)                     # [tn, d]

    if masked:
        key_ok = (j * tile_n
                  + jax.lax.broadcasted_iota(jnp.int32, (1, tile_n), 1)) < n_true

    # ---- per-head online-softmax attention over this key tile --------------
    for head in range(h):
        lo = head * p
        q_h = q_cache[head]                                         # [k, p]
        k_h = k_t[:, lo:lo + p]                                      # [tn, p]
        v_h = v_t[:, lo:lo + p]                                      # [tn, p]
        # Contract directly on the shared feature axis: no explicit K^T copy.
        s_h = jax.lax.dot_general(
            q_h, k_h, (((1,), (1,)), ((), ())),
            preferred_element_type=jnp.float32) * scale              # [k, tn]
        if masked:
            s_h = jnp.where(key_ok, s_h, -1e30)
        m_prev = m_sc[head]                                          # [k, 1]
        m_new = jnp.maximum(m_prev, s_h.max(axis=-1, keepdims=True))
        alpha = jnp.exp(m_prev - m_new)
        p_h = jnp.exp(s_h - m_new)
        l_sc[head] = alpha * l_sc[head] + p_h.sum(axis=-1, keepdims=True)
        acc_sc[head] = alpha * acc_sc[head] + jnp.dot(
            p_h.astype(compute_dtype), v_h, preferred_element_type=jnp.float32)
        m_sc[head] = m_new

    # ---- epilogue: normalize, concat heads, residual + LayerNorm -----------
    @pl.when(j == last_j)
    def _finalize():
        outs = [acc_sc[head] * pl.reciprocal(l_sc[head], approx=True)
                for head in range(h)]
        attn = jnp.concatenate(outs, axis=-1)                        # [k, d]
        r = seeds_ref[0] + attn                                      # f32 residual
        mu = jnp.mean(r, axis=-1, keepdims=True)
        var = jnp.mean(jnp.square(r - mu), axis=-1, keepdims=True)
        y = (r - mu) * jax.lax.rsqrt(var + eps)
        o_ref[0] = (y * gamma_ref[...] + beta_ref[...]).astype(o_ref.dtype)


def pooling_multihead_attention(z, seeds, wq, bq, wk, bk, wv, bv, gamma, beta,
                                *, h, tile_n=256, compute_dtype=jnp.bfloat16):
    """z: [b, n, d] f32; seeds: [1, k, d] (or [k, d]); weights in PyTorch Linear
    layout [out, in]; returns [b, k, d] f32 = LayerNorm(seeds + MHA(seeds, z, z))."""
    b, n, d = z.shape
    seeds2 = seeds.reshape(-1, d)
    k_seeds = seeds2.shape[0]
    assert d % h == 0
    p = d // h
    scale = 1.0 / (p ** 0.5)

    # ---- key-axis tiling (flash-style reduction over the input set) --------
    tile_n = min(tile_n, _round_up(n, 8))
    assert tile_n % 8 == 0
    n_pad = _round_up(n, tile_n)
    n_tiles = n_pad // tile_n
    masked = n_pad != n
    if masked:
        z = jnp.pad(z, ((0, 0), (0, n_pad - n), (0, 0)))

    # ---- boundary casts / layout glue (bf16 MXU operands, f32 elsewhere) ---
    z_c = z.astype(compute_dtype)
    seeds3 = seeds2.reshape(1, k_seeds, d).astype(jnp.float32)
    wq_t = wq.T.astype(compute_dtype)
    wk_t = wk.T.astype(compute_dtype)
    wv_t = wv.T.astype(compute_dtype)
    bq2 = bq.reshape(1, d).astype(jnp.float32)
    bk2 = bk.reshape(1, d).astype(jnp.float32)
    bv2 = bv.reshape(1, d).astype(jnp.float32)
    gamma2 = gamma.reshape(1, d).astype(jnp.float32)
    beta2 = beta.reshape(1, d).astype(jnp.float32)

    kernel = functools.partial(
        pma_kernel, h=h, p=p, tile_n=tile_n, n_true=n, masked=masked,
        scale=scale, eps=1e-5, compute_dtype=compute_dtype)

    itemsize = jnp.dtype(compute_dtype).itemsize
    cost = pl.CostEstimate(
        flops=2 * b * (k_seeds * d * d + 2 * n_pad * d * d + 2 * k_seeds * n_pad * d),
        transcendentals=b * h * k_seeds * n_pad,
        bytes_accessed=(b * n_pad * d * itemsize + 3 * d * d * itemsize
                        + 5 * d * 4 + k_seeds * d * 4 + b * k_seeds * d * 4),
    )

    grid_spec = pltpu.PrefetchScalarGridSpec(
        num_scalar_prefetch=0,
        grid=(b, n_tiles),
        in_specs=[
            pl.BlockSpec((1, k_seeds, d), lambda i, j: (0, 0, 0)),   # seeds (f32)
            pl.BlockSpec((1, tile_n, d), lambda i, j: (i, j, 0)),    # z key/value tile
            pl.BlockSpec((d, d), lambda i, j: (0, 0)),               # Wq^T
            pl.BlockSpec((1, d), lambda i, j: (0, 0)),               # bq
            pl.BlockSpec((d, d), lambda i, j: (0, 0)),               # Wk^T
            pl.BlockSpec((1, d), lambda i, j: (0, 0)),               # bk
            pl.BlockSpec((d, d), lambda i, j: (0, 0)),               # Wv^T
            pl.BlockSpec((1, d), lambda i, j: (0, 0)),               # bv
            pl.BlockSpec((1, d), lambda i, j: (0, 0)),               # gamma
            pl.BlockSpec((1, d), lambda i, j: (0, 0)),               # beta
        ],
        # Same output block across the key-tile (reduction) axis: resident
        # accumulator, written only at the last tile.
        out_specs=pl.BlockSpec((1, k_seeds, d), lambda i, j: (i, 0, 0)),
        scratch_shapes=[
            pltpu.VMEM((h, k_seeds, p), compute_dtype),   # cached per-head Q
            pltpu.VMEM((h, k_seeds, 1), jnp.float32),     # running max  m
            pltpu.VMEM((h, k_seeds, 1), jnp.float32),     # running denom l
            pltpu.VMEM((h, k_seeds, p), jnp.float32),     # running numerator
        ],
    )

    return pl.pallas_call(
        kernel,
        out_shape=jax.ShapeDtypeStruct((b, k_seeds, d), jnp.float32),
        grid_spec=grid_spec,
        compiler_params=pltpu.CompilerParams(
            dimension_semantics=("parallel", "arbitrary"),
            vmem_limit_bytes=32 * 1024 * 1024),
        cost_estimate=cost,
    )(seeds3, z_c, wq_t, bq2, wk_t, bk2, wv_t, bv2, gamma2, beta2)


def reference(z, seeds, wq, bq, wk, bk, wv, bv, gamma, beta, *, h):
    """Pure-JAX fp32 reference mirroring the PyTorch module literally."""
    b, n, d = z.shape
    k = seeds.reshape(-1, d).shape[0]
    p = d // h
    s = jnp.broadcast_to(seeds.reshape(1, k, d), (b, k, d)).astype(jnp.float32)
    q = s @ wq.T + bq
    kk = z @ wk.T + bk
    v = z @ wv.T + bv
    qh = q.reshape(b, k, h, p)
    kh = kk.reshape(b, n, h, p)
    vh = v.reshape(b, n, h, p)
    logits = jnp.einsum('bqhp,bnhp->bhqn', qh, kh) / (p ** 0.5)
    w = jax.nn.softmax(logits, axis=-1)
    o = jnp.einsum('bhqn,bnhp->bqhp', w, vh).reshape(b, k, d)
    r = s + o
    mu = r.mean(axis=-1, keepdims=True)
    var = ((r - mu) ** 2).mean(axis=-1, keepdims=True)
    return (r - mu) / jnp.sqrt(var + 1e-5) * gamma + beta


def _make_params(key, d):
    bound = 1.0 / (d ** 0.5)
    ks = jax.random.split(key, 8)
    wq = jax.random.uniform(ks[0], (d, d), jnp.float32, -bound, bound)
    bq = jax.random.uniform(ks[1], (d,), jnp.float32, -bound, bound)
    wk = jax.random.uniform(ks[2], (d, d), jnp.float32, -bound, bound)
    bk = jax.random.uniform(ks[3], (d,), jnp.float32, -bound, bound)
    wv = jax.random.uniform(ks[4], (d, d), jnp.float32, -bound, bound)
    bv = jax.random.uniform(ks[5], (d,), jnp.float32, -bound, bound)
    gamma = 1.0 + 0.1 * jax.random.normal(ks[6], (d,), jnp.float32)
    beta = 0.1 * jax.random.normal(ks[7], (d,), jnp.float32)
    return wq, bq, wk, bk, wv, bv, gamma, beta


def _run_case(key, *, b, n, k_seeds, d, h, tile_n):
    kz, ks, kp = jax.random.split(key, 3)
    z = jax.random.normal(kz, (b, n, d), jnp.float32)
    seeds = jax.random.normal(ks, (1, k_seeds, d), jnp.float32)
    params = _make_params(kp, d)

    out = pooling_multihead_attention(z, seeds, *params, h=h, tile_n=tile_n)
    out = jax.block_until_ready(out)

    ref = reference(z, seeds, *params, h=h)
    assert out.shape == (b, k_seeds, d)
    max_err = float(jnp.max(jnp.abs(out - ref)))
    # bf16 MXU operands with f32 accumulation -> small deviation vs fp32 reference.
    assert jnp.allclose(out, ref, atol=2e-2, rtol=2e-2), f"max_err={max_err}"


if __name__ == "__main__":
    root = jax.random.PRNGKey(0)
    key1, key2 = jax.random.split(root)

    # Small shapes consistent with the module: batch=2, set size n=8, hidden d=32,
    # h=4 heads, k=4 seed vectors.
    _run_case(key1, b=2, n=8, k_seeds=4, d=32, h=4, tile_n=256)

    # Exercises the multi-tile key reduction + padded-key masking path
    # (n=200 padded to 256, two 128-wide key tiles, lane-dense d=128).
    _run_case(key2, b=2, n=200, k_seeds=16, d=128, h=4, tile_n=128)

    print("KERNEL_OK")
</pallas_src>

<mosaic_0001>
module attributes {stable_mosaic.version = 11 : i64} {
  func.func @pma_kernel(%arg0: i32, %arg1: i32, %arg2: memref<1x4x32xf32, #tpu.memory_space<vmem>>, %arg3: memref<1x8x32xbf16, #tpu.memory_space<vmem>>, %arg4: memref<32x32xbf16, #tpu.memory_space<vmem>>, %arg5: memref<1x32xf32, #tpu.memory_space<vmem>>, %arg6: memref<32x32xbf16, #tpu.memory_space<vmem>>, %arg7: memref<1x32xf32, #tpu.memory_space<vmem>>, %arg8: memref<32x32xbf16, #tpu.memory_space<vmem>>, %arg9: memref<1x32xf32, #tpu.memory_space<vmem>>, %arg10: memref<1x32xf32, #tpu.memory_space<vmem>>, %arg11: memref<1x32xf32, #tpu.memory_space<vmem>>, %arg12: memref<1x4x32xf32, #tpu.memory_space<vmem>>, %arg13: memref<4x4x8xbf16, #tpu.memory_space<vmem>>, %arg14: memref<4x4x1xf32, #tpu.memory_space<vmem>>, %arg15: memref<4x4x1xf32, #tpu.memory_space<vmem>>, %arg16: memref<4x4x8xf32, #tpu.memory_space<vmem>>) attributes {dimension_semantics = [#tpu.dimension_semantics<parallel>, #tpu.dimension_semantics<arbitrary>], iteration_bounds = array<i64: 2, 1>, scalar_prefetch = 0 : i64, scratch_operands = 4 : i64, tpu.core_type = #tpu.core_type<tc>, window_params = [{pipeline_mode = #tpu.pipeline_mode<synchronous>, transform_indices = @transform_0, window_bounds = array<i64: 1, 4, 32>}, {transform_indices = @transform_1, window_bounds = array<i64: 1, 8, 32>}, {pipeline_mode = #tpu.pipeline_mode<synchronous>, transform_indices = @transform_2, window_bounds = array<i64: 32, 32>}, {pipeline_mode = #tpu.pipeline_mode<synchronous>, transform_indices = @transform_3, window_bounds = array<i64: 1, 32>}, {pipeline_mode = #tpu.pipeline_mode<synchronous>, transform_indices = @transform_4, window_bounds = array<i64: 32, 32>}, {pipeline_mode = #tpu.pipeline_mode<synchronous>, transform_indices = @transform_5, window_bounds = array<i64: 1, 32>}, {pipeline_mode = #tpu.pipeline_mode<synchronous>, transform_indices = @transform_6, window_bounds = array<i64: 32, 32>}, {pipeline_mode = #tpu.pipeline_mode<synchronous>, transform_indices = @transform_7, window_bounds = array<i64: 1, 32>}, {pipeline_mode = #tpu.pipeline_mode<synchronous>, transform_indices = @transform_8, window_bounds = array<i64: 1, 32>}, {pipeline_mode = #tpu.pipeline_mode<synchronous>, transform_indices = @transform_9, window_bounds = array<i64: 1, 32>}, {transform_indices = @transform_10, window_bounds = array<i64: 1, 4, 32>}]} {
    %c0_i32 = arith.constant 0 : i32
    %0 = arith.cmpi eq, %arg1, %c0_i32 : i32
    %1 = arith.extui %0 : i1 to i32
    %c0_i32_0 = arith.constant 0 : i32
    %2 = arith.cmpi ne, %1, %c0_i32_0 : i32
    scf.if %2 {
      %c0_115 = arith.constant 0 : index
      %c0_116 = arith.constant 0 : index
      %c0_117 = arith.constant 0 : index
      %176 = vector.load %arg2[%c0_115, %c0_116, %c0_117] : memref<1x4x32xf32, #tpu.memory_space<vmem>>, vector<1x4x32xf32>
      %177 = vector.shape_cast %176 : vector<1x4x32xf32> to vector<4x32xf32>
      %178 = arith.truncf %177 : vector<4x32xf32> to vector<4x32xbf16>
      %c0_118 = arith.constant 0 : index
      %c0_119 = arith.constant 0 : index
      %179 = vector.load %arg4[%c0_118, %c0_119] : memref<32x32xbf16, #tpu.memory_space<vmem>>, vector<32x32xbf16>
      %cst_120 = arith.constant dense<0.000000e+00> : vector<4x32xf32>
      %180 = tpu.matmul %178, %179, %cst_120 {dimension_numbers = #tpu.dot_dimension_numbers<[1], [0], [0], [1], [0, 0, 1, 1], [], []>} : vector<4x32xbf16>, vector<32x32xbf16>, vector<4x32xf32> -> vector<4x32xf32>
      %c0_121 = arith.constant 0 : index
      %c0_122 = arith.constant 0 : index
      %181 = vector.load %arg5[%c0_121, %c0_122] : memref<1x32xf32, #tpu.memory_space<vmem>>, vector<1x32xf32>
      %182 = vector.broadcast %181 : vector<1x32xf32> to vector<4x32xf32>
      %183 = arith.addf %180, %182 : vector<4x32xf32>
      %184 = arith.truncf %183 : vector<4x32xf32> to vector<4x32xbf16>
      %185 = vector.extract_strided_slice %184 {offsets = [0, 0], sizes = [4, 8], strides = [1, 1]} : vector<4x32xbf16> to vector<4x8xbf16>
      %c0_123 = arith.constant 0 : index
      %c0_124 = arith.constant 0 : index
      %c0_125 = arith.constant 0 : index
      %186 = vector.load %arg13[%c0_123, %c0_124, %c0_125] : memref<4x4x8xbf16, #tpu.memory_space<vmem>>, vector<1x4x8xbf16>
      %187 = vector.shape_cast %186 : vector<1x4x8xbf16> to vector<4x8xbf16>
      %188 = vector.shape_cast %185 : vector<4x8xbf16> to vector<1x4x8xbf16>
      tpu.vector_store %arg13[%c0_123, %c0_124, %c0_125], %188 {strides = array<i32>} : memref<4x4x8xbf16, #tpu.memory_space<vmem>>, vector<1x4x8xbf16>,
      %189 = vector.extract_strided_slice %184 {offsets = [0, 8], sizes = [4, 8], strides = [1, 1]} : vector<4x32xbf16> to vector<4x8xbf16>
      %c1_126 = arith.constant 1 : index
      %c0_127 = arith.constant 0 : index
      %c0_128 = arith.constant 0 : index
      %190 = vector.load %arg13[%c1_126, %c0_127, %c0_128] : memref<4x4x8xbf16, #tpu.memory_space<vmem>>, vector<1x4x8xbf16>
      %191 = vector.shape_cast %190 : vector<1x4x8xbf16> to vector<4x8xbf16>
      %192 = vector.shape_cast %189 : vector<4x8xbf16> to vector<1x4x8xbf16>
      tpu.vector_store %arg13[%c1_126, %c0_127, %c0_128], %192 {strides = array<i32>} : memref<4x4x8xbf16, #tpu.memory_space<vmem>>, vector<1x4x8xbf16>,
      %193 = vector.extract_strided_slice %184 {offsets = [0, 16], sizes = [4, 8], strides = [1, 1]} : vector<4x32xbf16> to vector<4x8xbf16>
      %c2_129 = arith.constant 2 : index
      %c0_130 = arith.constant 0 : index
      %c0_131 = arith.constant 0 : index
      %194 = vector.load %arg13[%c2_129, %c0_130, %c0_131] : memref<4x4x8xbf16, #tpu.memory_space<vmem>>, vector<1x4x8xbf16>
      %195 = vector.shape_cast %194 : vector<1x4x8xbf16> to vector<4x8xbf16>
      %196 = vector.shape_cast %193 : vector<4x8xbf16> to vector<1x4x8xbf16>
      tpu.vector_store %arg13[%c2_129, %c0_130, %c0_131], %196 {strides = array<i32>} : memref<4x4x8xbf16, #tpu.memory_space<vmem>>, vector<1x4x8xbf16>,
      %197 = vector.extract_strided_slice %184 {offsets = [0, 24], sizes = [4, 8], strides = [1, 1]} : vector<4x32xbf16> to vector<4x8xbf16>
      %c3_132 = arith.constant 3 : index
      %c0_133 = arith.constant 0 : index
      %c0_134 = arith.constant 0 : index
      %198 = vector.load %arg13[%c3_132, %c0_133, %c0_134] : memref<4x4x8xbf16, #tpu.memory_space<vmem>>, vector<1x4x8xbf16>
      %199 = vector.shape_cast %198 : vector<1x4x8xbf16> to vector<4x8xbf16>
      %200 = vector.shape_cast %197 : vector<4x8xbf16> to vector<1x4x8xbf16>
      tpu.vector_store %arg13[%c3_132, %c0_133, %c0_134], %200 {strides = array<i32>} : memref<4x4x8xbf16, #tpu.memory_space<vmem>>, vector<1x4x8xbf16>,
      %cst_135 = arith.constant -1.000000e+30 : f32
      %201 = vector.broadcast %cst_135 : f32 to vector<4x4x1xf32>
      %c0_136 = arith.constant 0 : index
      %c0_137 = arith.constant 0 : index
      %c0_138 = arith.constant 0 : index
      %202 = vector.load %arg14[%c0_136, %c0_137, %c0_138] : memref<4x4x1xf32, #tpu.memory_space<vmem>>, vector<4x4x1xf32>
      tpu.vector_store %arg14[%c0_136, %c0_137, %c0_138], %201 {strides = array<i32>} : memref<4x4x1xf32, #tpu.memory_space<vmem>>, vector<4x4x1xf32>,
      %cst_139 = arith.constant 0.000000e+00 : f32
      %203 = vector.broadcast %cst_139 : f32 to vector<4x4x1xf32>
      %c0_140 = arith.constant 0 : index
      %c0_141 = arith.constant 0 : index
      %c0_142 = arith.constant 0 : index
      %204 = vector.load %arg15[%c0_140, %c0_141, %c0_142] : memref<4x4x1xf32, #tpu.memory_space<vmem>>, vector<4x4x1xf32>
      tpu.vector_store %arg15[%c0_140, %c0_141, %c0_142], %203 {strides = array<i32>} : memref<4x4x1xf32, #tpu.memory_space<vmem>>, vector<4x4x1xf32>,
      %cst_143 = arith.constant 0.000000e+00 : f32
      %205 = vector.broadcast %cst_143 : f32 to vector<4x4x8xf32>
      %c0_144 = arith.constant 0 : index
      %c0_145 = arith.constant 0 : index
      %c0_146 = arith.constant 0 : index
      %206 = vector.load %arg16[%c0_144, %c0_145, %c0_146] : memref<4x4x8xf32, #tpu.memory_space<vmem>>, vector<4x4x8xf32>
      tpu.vector_store %arg16[%c0_144, %c0_145, %c0_146], %205 {strides = array<i32>} : memref<4x4x8xf32, #tpu.memory_space<vmem>>, vector<4x4x8xf32>,
    } else {
    }
    %c0 = arith.constant 0 : index
    %c0_1 = arith.constant 0 : index
    %c0_2 = arith.constant 0 : index
    %3 = vector.load %arg3[%c0, %c0_1, %c0_2] : memref<1x8x32xbf16, #tpu.memory_space<vmem>>, vector<1x8x32xbf16>
    %4 = vector.shape_cast %3 : vector<1x8x32xbf16> to vector<8x32xbf16>
    %c0_3 = arith.constant 0 : index
    %c0_4 = arith.constant 0 : index
    %5 = vector.load %arg6[%c0_3, %c0_4] : memref<32x32xbf16, #tpu.memory_space<vmem>>, vector<32x32xbf16>
    %cst = arith.constant dense<0.000000e+00> : vector<8x32xf32>
    %6 = tpu.matmul %4, %5, %cst {dimension_numbers = #tpu.dot_dimension_numbers<[1], [0], [0], [1], [0, 0, 1, 1], [], []>} : vector<8x32xbf16>, vector<32x32xbf16>, vector<8x32xf32> -> vector<8x32xf32>
    %c0_5 = arith.constant 0 : index
    %c0_6 = arith.constant 0 : index
    %7 = vector.load %arg7[%c0_5, %c0_6] : memref<1x32xf32, #tpu.memory_space<vmem>>, vector<1x32xf32>
    %8 = vector.broadcast %7 : vector<1x32xf32> to vector<8x32xf32>
    %9 = arith.addf %6, %8 : vector<8x32xf32>
    %10 = arith.truncf %9 : vector<8x32xf32> to vector<8x32xbf16>
    %c0_7 = arith.constant 0 : index
    %c0_8 = arith.constant 0 : index
    %11 = vector.load %arg8[%c0_7, %c0_8] : memref<32x32xbf16, #tpu.memory_space<vmem>>, vector<32x32xbf16>
    %cst_9 = arith.constant dense<0.000000e+00> : vector<8x32xf32>
    %12 = tpu.matmul %4, %11, %cst_9 {dimension_numbers = #tpu.dot_dimension_numbers<[1], [0], [0], [1], [0, 0, 1, 1], [], []>} : vector<8x32xbf16>, vector<32x32xbf16>, vector<8x32xf32> -> vector<8x32xf32>
    %c0_10 = arith.constant 0 : index
    %c0_11 = arith.constant 0 : index
    %13 = vector.load %arg9[%c0_10, %c0_11] : memref<1x32xf32, #tpu.memory_space<vmem>>, vector<1x32xf32>
    %14 = vector.broadcast %13 : vector<1x32xf32> to vector<8x32xf32>
    %15 = arith.addf %12, %14 : vector<8x32xf32>
    %16 = arith.truncf %15 : vector<8x32xf32> to vector<8x32xbf16>
    %c0_12 = arith.constant 0 : index
    %c0_13 = arith.constant 0 : index
    %c0_14 = arith.constant 0 : index
    %17 = vector.load %arg13[%c0_12, %c0_13, %c0_14] : memref<4x4x8xbf16, #tpu.memory_space<vmem>>, vector<1x4x8xbf16>
    %18 = vector.shape_cast %17 : vector<1x4x8xbf16> to vector<4x8xbf16>
    %19 = vector.extract_strided_slice %10 {offsets = [0, 0], sizes = [8, 8], strides = [1, 1]} : vector<8x32xbf16> to vector<8x8xbf16>
    %20 = vector.extract_strided_slice %16 {offsets = [0, 0], sizes = [8, 8], strides = [1, 1]} : vector<8x32xbf16> to vector<8x8xbf16>
    %cst_15 = arith.constant dense<0.000000e+00> : vector<4x8xf32>
    %21 = tpu.matmul %18, %19, %cst_15 {dimension_numbers = #tpu.dot_dimension_numbers<[1], [1], [0], [0], [0, 0, 1, 0], [], []>} : vector<4x8xbf16>, vector<8x8xbf16>, vector<4x8xf32> -> vector<4x8xf32>
    %cst_16 = arith.constant 0.353553385 : f32
    %22 = vector.broadcast %cst_16 : f32 to vector<4x8xf32>
    %23 = arith.mulf %21, %22 : vector<4x8xf32>
    %c0_17 = arith.constant 0 : index
    %c0_18 = arith.constant 0 : index
    %c0_19 = arith.constant 0 : index
    %24 = vector.load %arg14[%c0_17, %c0_18, %c0_19] : memref<4x4x1xf32, #tpu.memory_space<vmem>>, vector<1x4x1xf32>
    %25 = vector.shape_cast %24 : vector<1x4x1xf32> to vector<4x1xf32>
    %cst_20 = arith.constant dense<0xFF800000> : vector<4xf32>
    %26 = vector.multi_reduction <maximumf>, %23, %cst_20 [1] : vector<4x8xf32> to vector<4xf32>
    %27 = vector.shape_cast %26 : vector<4xf32> to vector<4x1xf32>
    %28 = arith.maximumf %25, %27 : vector<4x1xf32>
    %29 = arith.subf %25, %28 : vector<4x1xf32>
    %30 = math.exp %29 : vector<4x1xf32>
    %31 = vector.broadcast %28 : vector<4x1xf32> to vector<4x8xf32>
    %32 = arith.subf %23, %31 : vector<4x8xf32>
    %33 = math.exp %32 : vector<4x8xf32>
    %c0_21 = arith.constant 0 : index
    %c0_22 = arith.constant 0 : index
    %c0_23 = arith.constant 0 : index
    %34 = vector.load %arg15[%c0_21, %c0_22, %c0_23] : memref<4x4x1xf32, #tpu.memory_space<vmem>>, vector<1x4x1xf32>
    %35 = vector.shape_cast %34 : vector<1x4x1xf32> to vector<4x1xf32>
    %36 = arith.mulf %30, %35 : vector<4x1xf32>
    %cst_24 = arith.constant dense<0.000000e+00> : vector<4xf32>
    %37 = vector.multi_reduction <add>, %33, %cst_24 [1] : vector<4x8xf32> to vector<4xf32>
    %38 = vector.shape_cast %37 : vector<4xf32> to vector<4x1xf32>
    %39 = arith.addf %36, %38 : vector<4x1xf32>
    %c0_25 = arith.constant 0 : index
    %c0_26 = arith.constant 0 : index
    %c0_27 = arith.constant 0 : index
    %40 = vector.load %arg15[%c0_25, %c0_26, %c0_27] : memref<4x4x1xf32, #tpu.memory_space<vmem>>, vector<1x4x1xf32>
    %41 = vector.shape_cast %40 : vector<1x4x1xf32> to vector<4x1xf32>
    %42 = vector.shape_cast %39 : vector<4x1xf32> to vector<1x4x1xf32>
    tpu.vector_store %arg15[%c0_25, %c0_26, %c0_27], %42 {strides = array<i32>} : memref<4x4x1xf32, #tpu.memory_space<vmem>>, vector<1x4x1xf32>,
    %c0_28 = arith.constant 0 : index
    %c0_29 = arith.constant 0 : index
    %c0_30 = arith.constant 0 : index
    %43 = vector.load %arg16[%c0_28, %c0_29, %c0_30] : memref<4x4x8xf32, #tpu.memory_space<vmem>>, vector<1x4x8xf32>
    %44 = vector.shape_cast %43 : vector<1x4x8xf32> to vector<4x8xf32>
    %45 = vector.broadcast %30 : vector<4x1xf32> to vector<4x8xf32>
    %46 = arith.mulf %45, %44 : vector<4x8xf32>
    %47 = arith.truncf %33 : vector<4x8xf32> to vector<4x8xbf16>
    %cst_31 = arith.constant dense<0.000000e+00> : vector<4x8xf32>
    %48 = tpu.matmul %47, %20, %cst_31 {dimension_numbers = #tpu.dot_dimension_numbers<[1], [0], [0], [1], [0, 0, 1, 1], [], []>} : vector<4x8xbf16>, vector<8x8xbf16>, vector<4x8xf32> -> vector<4x8xf32>
    %49 = arith.addf %46, %48 : vector<4x8xf32>
    %c0_32 = arith.constant 0 : index
    %c0_33 = arith.constant 0 : index
    %c0_34 = arith.constant 0 : index
    %50 = vector.load %arg16[%c0_32, %c0_33, %c0_34] : memref<4x4x8xf32, #tpu.memory_space<vmem>>, vector<1x4x8xf32>
    %51 = vector.shape_cast %50 : vector<1x4x8xf32> to vector<4x8xf32>
    %52 = vector.shape_cast %49 : vector<4x8xf32> to vector<1x4x8xf32>
    tpu.vector_store %arg16[%c0_32, %c0_33, %c0_34], %52 {strides = array<i32>} : memref<4x4x8xf32, #tpu.memory_space<vmem>>, vector<1x4x8xf32>,
    %c0_35 = arith.constant 0 : index
    %c0_36 = arith.constant 0 : index
    %c0_37 = arith.constant 0 : index
    %53 = vector.load %arg14[%c0_35, %c0_36, %c0_37] : memref<4x4x1xf32, #tpu.memory_space<vmem>>, vector<1x4x1xf32>
    %54 = vector.shape_cast %53 : vector<1x4x1xf32> to vector<4x1xf32>
    %55 = vector.shape_cast %28 : vector<4x1xf32> to vector<1x4x1xf32>
    tpu.vector_store %arg14[%c0_35, %c0_36, %c0_37], %55 {strides = array<i32>} : memref<4x4x1xf32, #tpu.memory_space<vmem>>, vector<1x4x1xf32>,
    %c1 = arith.constant 1 : index
    %c0_38 = arith.constant 0 : index
    %c0_39 = arith.constant 0 : index
    %56 = vector.load %arg13[%c1, %c0_38, %c0_39] : memref<4x4x8xbf16, #tpu.memory_space<vmem>>, vector<1x4x8xbf16>
    %57 = vector.shape_cast %56 : vector<1x4x8xbf16> to vector<4x8xbf16>
    %58 = vector.extract_strided_slice %10 {offsets = [0, 8], sizes = [8, 8], strides = [1, 1]} : vector<8x32xbf16> to vector<8x8xbf16>
    %59 = vector.extract_strided_slice %16 {offsets = [0, 8], sizes = [8, 8], strides = [1, 1]} : vector<8x32xbf16> to vector<8x8xbf16>
    %cst_40 = arith.constant dense<0.000000e+00> : vector<4x8xf32>
    %60 = tpu.matmul %57, %58, %cst_40 {dimension_numbers = #tpu.dot_dimension_numbers<[1], [1], [0], [0], [0, 0, 1, 0], [], []>} : vector<4x8xbf16>, vector<8x8xbf16>, vector<4x8xf32> -> vector<4x8xf32>
    %cst_41 = arith.constant 0.353553385 : f32
    %61 = vector.broadcast %cst_41 : f32 to vector<4x8xf32>
    %62 = arith.mulf %60, %61 : vector<4x8xf32>
    %c1_42 = arith.constant 1 : index
    %c0_43 = arith.constant 0 : index
    %c0_44 = arith.constant 0 : index
    %63 = vector.load %arg14[%c1_42, %c0_43, %c0_44] : memref<4x4x1xf32, #tpu.memory_space<vmem>>, vector<1x4x1xf32>
    %64 = vector.shape_cast %63 : vector<1x4x1xf32> to vector<4x1xf32>
    %cst_45 = arith.constant dense<0xFF800000> : vector<4xf32>
    %65 = vector.multi_reduction <maximumf>, %62, %cst_45 [1] : vector<4x8xf32> to vector<4xf32>
    %66 = vector.shape_cast %65 : vector<4xf32> to vector<4x1xf32>
    %67 = arith.maximumf %64, %66 : vector<4x1xf32>
    %68 = arith.subf %64, %67 : vector<4x1xf32>
    %69 = math.exp %68 : vector<4x1xf32>
    %70 = vector.broadcast %67 : vector<4x1xf32> to vector<4x8xf32>
    %71 = arith.subf %62, %70 : vector<4x8xf32>
    %72 = math.exp %71 : vector<4x8xf32>
    %c1_46 = arith.constant 1 : index
    %c0_47 = arith.constant 0 : index
    %c0_48 = arith.constant 0 : index
    %73 = vector.load %arg15[%c1_46, %c0_47, %c0_48] : memref<4x4x1xf32, #tpu.memory_space<vmem>>, vector<1x4x1xf32>
    %74 = vector.shape_cast %73 : vector<1x4x1xf32> to vector<4x1xf32>
    %75 = arith.mulf %69, %74 : vector<4x1xf32>
    %cst_49 = arith.constant dense<0.000000e+00> : vector<4xf32>
    %76 = vector.multi_reduction <add>, %72, %cst_49 [1] : vector<4x8xf32> to vector<4xf32>
    %77 = vector.shape_cast %76 : vector<4xf32> to vector<4x1xf32>
    %78 = arith.addf %75, %77 : vector<4x1xf32>
    %c1_50 = arith.constant 1 : index
    %c0_51 = arith.constant 0 : index
    %c0_52 = arith.constant 0 : index
    %79 = vector.load %arg15[%c1_50, %c0_51, %c0_52] : memref<4x4x1xf32, #tpu.memory_space<vmem>>, vector<1x4x1xf32>
    %80 = vector.shape_cast %79 : vector<1x4x1xf32> to vector<4x1xf32>
    %81 = vector.shape_cast %78 : vector<4x1xf32> to vector<1x4x1xf32>
    tpu.vector_store %arg15[%c1_50, %c0_51, %c0_52], %81 {strides = array<i32>} : memref<4x4x1xf32, #tpu.memory_space<vmem>>, vector<1x4x1xf32>,
    %c1_53 = arith.constant 1 : index
    %c0_54 = arith.constant 0 : index
    %c0_55 = arith.constant 0 : index
    %82 = vector.load %arg16[%c1_53, %c0_54, %c0_55] : memref<4x4x8xf32, #tpu.memory_space<vmem>>, vector<1x4x8xf32>
    %83 = vector.shape_cast %82 : vector<1x4x8xf32> to vector<4x8xf32>
    %84 = vector.broadcast %69 : vector<4x1xf32> to vector<4x8xf32>
    %85 = arith.mulf %84, %83 : vector<4x8xf32>
    %86 = arith.truncf %72 : vector<4x8xf32> to vector<4x8xbf16>
    %cst_56 = arith.constant dense<0.000000e+00> : vector<4x8xf32>
    %87 = tpu.matmul %86, %59, %cst_56 {dimension_numbers = #tpu.dot_dimension_numbers<[1], [0], [0], [1], [0, 0, 1, 1], [], []>} : vector<4x8xbf16>, vector<8x8xbf16>, vector<4x8xf32> -> vector<4x8xf32>
    %88 = arith.addf %85, %87 : vector<4x8xf32>
    %c1_57 = arith.constant 1 : index
    %c0_58 = arith.constant 0 : index
    %c0_59 = arith.constant 0 : index
    %89 = vector.load %arg16[%c1_57, %c0_58, %c0_59] : memref<4x4x8xf32, #tpu.memory_space<vmem>>, vector<1x4x8xf32>
    %90 = vector.shape_cast %89 : vector<1x4x8xf32> to vector<4x8xf32>
    %91 = vector.shape_cast %88 : vector<4x8xf32> to vector<1x4x8xf32>
    tpu.vector_store %arg16[%c1_57, %c0_58, %c0_59], %91 {strides = array<i32>} : memref<4x4x8xf32, #tpu.memory_space<vmem>>, vector<1x4x8xf32>,
    %c1_60 = arith.constant 1 : index
    %c0_61 = arith.constant 0 : index
    %c0_62 = arith.constant 0 : index
    %92 = vector.load %arg14[%c1_60, %c0_61, %c0_62] : memref<4x4x1xf32, #tpu.memory_space<vmem>>, vector<1x4x1xf32>
    %93 = vector.shape_cast %92 : vector<1x4x1xf32> to vector<4x1xf32>
    %94 = vector.shape_cast %67 : vector<4x1xf32> to vector<1x4x1xf32>
    tpu.vector_store %arg14[%c1_60, %c0_61, %c0_62], %94 {strides = array<i32>} : memref<4x4x1xf32, #tpu.memory_space<vmem>>, vector<1x4x1xf32>,
    %c2 = arith.constant 2 : index
    %c0_63 = arith.constant 0 : index
    %c0_64 = arith.constant 0 : index
    %95 = vector.load %arg13[%c2, %c0_63, %c0_64] : memref<4x4x8xbf16, #tpu.memory_space<vmem>>, vector<1x4x8xbf16>
    %96 = vector.shape_cast %95 : vector<1x4x8xbf16> to vector<4x8xbf16>
    %97 = vector.extract_strided_slice %10 {offsets = [0, 16], sizes = [8, 8], strides = [1, 1]} : vector<8x32xbf16> to vector<8x8xbf16>
    %98 = vector.extract_strided_slice %16 {offsets = [0, 16], sizes = [8, 8], strides = [1, 1]} : vector<8x32xbf16> to vector<8x8xbf16>
    %cst_65 = arith.constant dense<0.000000e+00> : vector<4x8xf32>
    %99 = tpu.matmul %96, %97, %cst_65 {dimension_numbers = #tpu.dot_dimension_numbers<[1], [1], [0], [0], [0, 0, 1, 0], [], []>} : vector<4x8xbf16>, vector<8x8xbf16>, vector<4x8xf32> -> vector<4x8xf32>
    %cst_66 = arith.constant 0.353553385 : f32
    %100 = vector.broadcast %cst_66 : f32 to vector<4x8xf32>
    %101 = arith.mulf %99, %100 : vector<4x8xf32>
    %c2_67 = arith.constant 2 : index
    %c0_68 = arith.constant 0 : index
    %c0_69 = arith.constant 0 : index
    %102 = vector.load %arg14[%c2_67, %c0_68, %c0_69] : memref<4x4x1xf32, #tpu.memory_space<vmem>>, vector<1x4x1xf32>
    %103 = vector.shape_cast %102 : vector<1x4x1xf32> to vector<4x1xf32>
    %cst_70 = arith.constant dense<0xFF800000> : vector<4xf32>
    %104 = vector.multi_reduction <maximumf>, %101, %cst_70 [1] : vector<4x8xf32> to vector<4xf32>
    %105 = vector.shape_cast %104 : vector<4xf32> to vector<4x1xf32>
    %106 = arith.maximumf %103, %105 : vector<4x1xf32>
    %107 = arith.subf %103, %106 : vector<4x1xf32>
    %108 = math.exp %107 : vector<4x1xf32>
    %109 = vector.broadcast %106 : vector<4x1xf32> to vector<4x8xf32>
    %110 = arith.subf %101, %109 : vector<4x8xf32>
    %111 = math.exp %110 : vector<4x8xf32>
    %c2_71 = arith.constant 2 : index
    %c0_72 = arith.constant 0 : index
    %c0_73 = arith.constant 0 : index
    %112 = vector.load %arg15[%c2_71, %c0_72, %c0_73] : memref<4x4x1xf32, #tpu.memory_space<vmem>>, vector<1x4x1xf32>
    %113 = vector.shape_cast %112 : vector<1x4x1xf32> to vector<4x1xf32>
    %114 = arith.mulf %108, %113 : vector<4x1xf32>
    %cst_74 = arith.constant dense<0.000000e+00> : vector<4xf32>
    %115 = vector.multi_reduction <add>, %111, %cst_74 [1] : vector<4x8xf32> to vector<4xf32>
    %116 = vector.shape_cast %115 : vector<4xf32> to vector<4x1xf32>
    %117 = arith.addf %114, %116 : vector<4x1xf32>
    %c2_75 = arith.constant 2 : index
    %c0_76 = arith.constant 0 : index
    %c0_77 = arith.constant 0 : index
    %118 = vector.load %arg15[%c2_75, %c0_76, %c0_77] : memref<4x4x1xf32, #tpu.memory_space<vmem>>, vector<1x4x1xf32>
    %119 = vector.shape_cast %118 : vector<1x4x1xf32> to vector<4x1xf32>
    %120 = vector.shape_cast %117 : vector<4x1xf32> to vector<1x4x1xf32>
    tpu.vector_store %arg15[%c2_75, %c0_76, %c0_77], %120 {strides = array<i32>} : memref<4x4x1xf32, #tpu.memory_space<vmem>>, vector<1x4x1xf32>,
    %c2_78 = arith.constant 2 : index
    %c0_79 = arith.constant 0 : index
    %c0_80 = arith.constant 0 : index
    %121 = vector.load %arg16[%c2_78, %c0_79, %c0_80] : memref<4x4x8xf32, #tpu.memory_space<vmem>>, vector<1x4x8xf32>
    %122 = vector.shape_cast %121 : vector<1x4x8xf32> to vector<4x8xf32>
    %123 = vector.broadcast %108 : vector<4x1xf32> to vector<4x8xf32>
    %124 = arith.mulf %123, %122 : vector<4x8xf32>
    %125 = arith.truncf %111 : vector<4x8xf32> to vector<4x8xbf16>
    %cst_81 = arith.constant dense<0.000000e+00> : vector<4x8xf32>
    %126 = tpu.matmul %125, %98, %cst_81 {dimension_numbers = #tpu.dot_dimension_numbers<[1], [0], [0], [1], [0, 0, 1, 1], [], []>} : vector<4x8xbf16>, vector<8x8xbf16>, vector<4x8xf32> -> vector<4x8xf32>
    %127 = arith.addf %124, %126 : vector<4x8xf32>
    %c2_82 = arith.constant 2 : index
    %c0_83 = arith.constant 0 : index
    %c0_84 = arith.constant 0 : index
    %128 = vector.load %arg16[%c2_82, %c0_83, %c0_84] : memref<4x4x8xf32, #tpu.memory_space<vmem>>, vector<1x4x8xf32>
    %129 = vector.shape_cast %128 : vector<1x4x8xf32> to vector<4x8xf32>
    %130 = vector.shape_cast %127 : vector<4x8xf32> to vector<1x4x8xf32>
    tpu.vector_store %arg16[%c2_82, %c0_83, %c0_84], %130 {strides = array<i32>} : memref<4x4x8xf32, #tpu.memory_space<vmem>>, vector<1x4x8xf32>,
    %c2_85 = arith.constant 2 : index
    %c0_86 = arith.constant 0 : index
    %c0_87 = arith.constant 0 : index
    %131 = vector.load %arg14[%c2_85, %c0_86, %c0_87] : memref<4x4x1xf32, #tpu.memory_space<vmem>>, vector<1x4x1xf32>
    %132 = vector.shape_cast %131 : vector<1x4x1xf32> to vector<4x1xf32>
    %133 = vector.shape_cast %106 : vector<4x1xf32> to vector<1x4x1xf32>
    tpu.vector_store %arg14[%c2_85, %c0_86, %c0_87], %133 {strides = array<i32>} : memref<4x4x1xf32, #tpu.memory_space<vmem>>, vector<1x4x1xf32>,
    %c3 = arith.constant 3 : index
    %c0_88 = arith.constant 0 : index
    %c0_89 = arith.constant 0 : index
    %134 = vector.load %arg13[%c3, %c0_88, %c0_89] : memref<4x4x8xbf16, #tpu.memory_space<vmem>>, vector<1x4x8xbf16>
    %135 = vector.shape_cast %134 : vector<1x4x8xbf16> to vector<4x8xbf16>
    %136 = vector.extract_strided_slice %10 {offsets = [0, 24], sizes = [8, 8], strides = [1, 1]} : vector<8x32xbf16> to vector<8x8xbf16>
    %137 = vector.extract_strided_slice %16 {offsets = [0, 24], sizes = [8, 8], strides = [1, 1]} : vector<8x32xbf16> to vector<8x8xbf16>
    %cst_90 = arith.constant dense<0.000000e+00> : vector<4x8xf32>
    %138 = tpu.matmul %135, %136, %cst_90 {dimension_numbers = #tpu.dot_dimension_numbers<[1], [1], [0], [0], [0, 0, 1, 0], [], []>} : vector<4x8xbf16>, vector<8x8xbf16>, vector<4x8xf32> -> vector<4x8xf32>
    %cst_91 = arith.constant 0.353553385 : f32
    %139 = vector.broadcast %cst_91 : f32 to vector<4x8xf32>
    %140 = arith.mulf %138, %139 : vector<4x8xf32>
    %c3_92 = arith.constant 3 : index
    %c0_93 = arith.constant 0 : index
    %c0_94 = arith.constant 0 : index
    %141 = vector.load %arg14[%c3_92, %c0_93, %c0_94] : memref<4x4x1xf32, #tpu.memory_space<vmem>>, vector<1x4x1xf32>
    %142 = vector.shape_cast %141 : vector<1x4x1xf32> to vector<4x1xf32>
    %cst_95 = arith.constant dense<0xFF800000> : vector<4xf32>
    %143 = vector.multi_reduction <maximumf>, %140, %cst_95 [1] : vector<4x8xf32> to vector<4xf32>
    %144 = vector.shape_cast %143 : vector<4xf32> to vector<4x1xf32>
    %145 = arith.maximumf %142, %144 : vector<4x1xf32>
    %146 = arith.subf %142, %145 : vector<4x1xf32>
    %147 = math.exp %146 : vector<4x1xf32>
    %148 = vector.broadcast %145 : vector<4x1xf32> to vector<4x8xf32>
    %149 = arith.subf %140, %148 : vector<4x8xf32>
    %150 = math.exp %149 : vector<4x8xf32>
    %c3_96 = arith.constant 3 : index
    %c0_97 = arith.constant 0 : index
    %c0_98 = arith.constant 0 : index
    %151 = vector.load %arg15[%c3_96, %c0_97, %c0_98] : memref<4x4x1xf32, #tpu.memory_space<vmem>>, vector<1x4x1xf32>
    %152 = vector.shape_cast %151 : vector<1x4x1xf32> to vector<4x1xf32>
    %153 = arith.mulf %147, %152 : vector<4x1xf32>
    %cst_99 = arith.constant dense<0.000000e+00> : vector<4xf32>
    %154 = vector.multi_reduction <add>, %150, %cst_99 [1] : vector<4x8xf32> to vector<4xf32>
    %155 = vector.shape_cast %154 : vector<4xf32> to vector<4x1xf32>
    %156 = arith.addf %153, %155 : vector<4x1xf32>
    %c3_100 = arith.constant 3 : index
    %c0_101 = arith.constant 0 : index
    %c0_102 = arith.constant 0 : index
    %157 = vector.load %arg15[%c3_100, %c0_101, %c0_102] : memref<4x4x1xf32, #tpu.memory_space<vmem>>, vector<1x4x1xf32>
    %158 = vector.shape_cast %157 : vector<1x4x1xf32> to vector<4x1xf32>
    %159 = vector.shape_cast %156 : vector<4x1xf32> to vector<1x4x1xf32>
    tpu.vector_store %arg15[%c3_100, %c0_101, %c0_102], %159 {strides = array<i32>} : memref<4x4x1xf32, #tpu.memory_space<vmem>>, vector<1x4x1xf32>,
    %c3_103 = arith.constant 3 : index
    %c0_104 = arith.constant 0 : index
    %c0_105 = arith.constant 0 : index
    %160 = vector.load %arg16[%c3_103, %c0_104, %c0_105] : memref<4x4x8xf32, #tpu.memory_space<vmem>>, vector<1x4x8xf32>
    %161 = vector.shape_cast %160 : vector<1x4x8xf32> to vector<4x8xf32>
    %162 = vector.broadcast %147 : vector<4x1xf32> to vector<4x8xf32>
    %163 = arith.mulf %162, %161 : vector<4x8xf32>
    %164 = arith.truncf %150 : vector<4x8xf32> to vector<4x8xbf16>
    %cst_106 = arith.constant dense<0.000000e+00> : vector<4x8xf32>
    %165 = tpu.matmul %164, %137, %cst_106 {dimension_numbers = #tpu.dot_dimension_numbers<[1], [0], [0], [1], [0, 0, 1, 1], [], []>} : vector<4x8xbf16>, vector<8x8xbf16>, vector<4x8xf32> -> vector<4x8xf32>
    %166 = arith.addf %163, %165 : vector<4x8xf32>
    %c3_107 = arith.constant 3 : index
    %c0_108 = arith.constant 0 : index
    %c0_109 = arith.constant 0 : index
    %167 = vector.load %arg16[%c3_107, %c0_108, %c0_109] : memref<4x4x8xf32, #tpu.memory_space<vmem>>, vector<1x4x8xf32>
    %168 = vector.shape_cast %167 : vector<1x4x8xf32> to vector<4x8xf32>
    %169 = vector.shape_cast %166 : vector<4x8xf32> to vector<1x4x8xf32>
    tpu.vector_store %arg16[%c3_107, %c0_108, %c0_109], %169 {strides = array<i32>} : memref<4x4x8xf32, #tpu.memory_space<vmem>>, vector<1x4x8xf32>,
    %c3_110 = arith.constant 3 : index
    %c0_111 = arith.constant 0 : index
    %c0_112 = arith.constant 0 : index
    %170 = vector.load %arg14[%c3_110, %c0_111, %c0_112] : memref<4x4x1xf32, #tpu.memory_space<vmem>>, vector<1x4x1xf32>
    %171 = vector.shape_cast %170 : vector<1x4x1xf32> to vector<4x1xf32>
    %172 = vector.shape_cast %145 : vector<4x1xf32> to vector<1x4x1xf32>
    tpu.vector_store %arg14[%c3_110, %c0_111, %c0_112], %172 {strides = array<i32>} : memref<4x4x1xf32, #tpu.memory_space<vmem>>, vector<1x4x1xf32>,
    %c0_i32_113 = arith.constant 0 : i32
    %173 = arith.cmpi eq, %arg1, %c0_i32_113 : i32
    %174 = arith.extui %173 : i1 to i32
    %c0_i32_114 = arith.constant 0 : i32
    %175 = arith.cmpi ne, %174, %c0_i32_114 : i32
    scf.if %175 {
      %c0_115 = arith.constant 0 : index
      %c0_116 = arith.constant 0 : index
      %c0_117 = arith.constant 0 : index
      %176 = vector.load %arg16[%c0_115, %c0_116, %c0_117] : memref<4x4x8xf32, #tpu.memory_space<vmem>>, vector<1x4x8xf32>
      %177 = vector.shape_cast %176 : vector<1x4x8xf32> to vector<4x8xf32>
      %c0_118 = arith.constant 0 : index
      %c0_119 = arith.constant 0 : index
      %c0_120 = arith.constant 0 : index
      %178 = vector.load %arg15[%c0_118, %c0_119, %c0_120] : memref<4x4x1xf32, #tpu.memory_space<vmem>>, vector<1x4x1xf32>
      %179 = vector.shape_cast %178 : vector<1x4x1xf32> to vector<4x1xf32>
      %180 = tpu.reciprocal %179 {approx = true} : vector<4x1xf32> -> vector<4x1xf32>
      %181 = vector.broadcast %180 : vector<4x1xf32> to vector<4x8xf32>
      %182 = arith.mulf %177, %181 : vector<4x8xf32>
      %c1_121 = arith.constant 1 : index
      %c0_122 = arith.constant 0 : index
      %c0_123 = arith.constant 0 : index
      %183 = vector.load %arg16[%c1_121, %c0_122, %c0_123] : memref<4x4x8xf32, #tpu.memory_space<vmem>>, vector<1x4x8xf32>
      %184 = vector.shape_cast %183 : vector<1x4x8xf32> to vector<4x8xf32>
      %c1_124 = arith.constant 1 : index
      %c0_125 = arith.constant 0 : index
      %c0_126 = arith.constant 0 : index
      %185 = vector.load %arg15[%c1_124, %c0_125, %c0_126] : memref<4x4x1xf32, #tpu.memory_space<vmem>>, vector<1x4x1xf32>
      %186 = vector.shape_cast %185 : vector<1x4x1xf32> to vector<4x1xf32>
      %187 = tpu.reciprocal %186 {approx = true} : vector<4x1xf32> -> vector<4x1xf32>
      %188 = vector.broadcast %187 : vector<4x1xf32> to vector<4x8xf32>
      %189 = arith.mulf %184, %188 : vector<4x8xf32>
      %c2_127 = arith.constant 2 : index
      %c0_128 = arith.constant 0 : index
      %c0_129 = arith.constant 0 : index
      %190 = vector.load %arg16[%c2_127, %c0_128, %c0_129] : memref<4x4x8xf32, #tpu.memory_space<vmem>>, vector<1x4x8xf32>
      %191 = vector.shape_cast %190 : vector<1x4x8xf32> to vector<4x8xf32>
      %c2_130 = arith.constant 2 : index
      %c0_131 = arith.constant 0 : index
      %c0_132 = arith.constant 0 : index
      %192 = vector.load %arg15[%c2_130, %c0_131, %c0_132] : memref<4x4x1xf32, #tpu.memory_space<vmem>>, vector<1x4x1xf32>
      %193 = vector.shape_cast %192 : vector<1x4x1xf32> to vector<4x1xf32>
      %194 = tpu.reciprocal %193 {approx = true} : vector<4x1xf32> -> vector<4x1xf32>
      %195 = vector.broadcast %194 : vector<4x1xf32> to vector<4x8xf32>
      %196 = arith.mulf %191, %195 : vector<4x8xf32>
      %c3_133 = arith.constant 3 : index
      %c0_134 = arith.constant 0 : index
      %c0_135 = arith.constant 0 : index
      %197 = vector.load %arg16[%c3_133, %c0_134, %c0_135] : memref<4x4x8xf32, #tpu.memory_space<vmem>>, vector<1x4x8xf32>
      %198 = vector.shape_cast %197 : vector<1x4x8xf32> to vector<4x8xf32>
      %c3_136 = arith.constant 3 : index
      %c0_137 = arith.constant 0 : index
      %c0_138 = arith.constant 0 : index
      %199 = vector.load %arg15[%c3_136, %c0_137, %c0_138] : memref<4x4x1xf32, #tpu.memory_space<vmem>>, vector<1x4x1xf32>
      %200 = vector.shape_cast %199 : vector<1x4x1xf32> to vector<4x1xf32>
      %201 = tpu.reciprocal %200 {approx = true} : vector<4x1xf32> -> vector<4x1xf32>
      %202 = vector.broadcast %201 : vector<4x1xf32> to vector<4x8xf32>
      %203 = arith.mulf %198, %202 : vector<4x8xf32>
      %204 = tpu.concatenate %182, %189, %196, %203 in 1 : vector<4x8xf32>, vector<4x8xf32>, vector<4x8xf32>, vector<4x8xf32> -> vector<4x32xf32>
      %c0_139 = arith.constant 0 : index
      %c0_140 = arith.constant 0 : index
      %c0_141 = arith.constant 0 : index
      %205 = vector.load %arg2[%c0_139, %c0_140, %c0_141] : memref<1x4x32xf32, #tpu.memory_space<vmem>>, vector<1x4x32xf32>
      %206 = vector.shape_cast %205 : vector<1x4x32xf32> to vector<4x32xf32>
      %207 = arith.addf %206, %204 : vector<4x32xf32>
      %cst_142 = arith.constant dense<0.000000e+00> : vector<4xf32>
      %208 = vector.multi_reduction <add>, %207, %cst_142 [1] : vector<4x32xf32> to vector<4xf32>
      %209 = vector.shape_cast %208 : vector<4xf32> to vector<4x1xf32>
      %cst_143 = arith.constant 3.200000e+01 : f32
      %210 = vector.broadcast %cst_143 : f32 to vector<4x1xf32>
      %211 = arith.divf %209, %210 : vector<4x1xf32>
      %212 = vector.broadcast %211 : vector<4x1xf32> to vector<4x32xf32>
      %213 = arith.subf %207, %212 : vector<4x32xf32>
      %214 = arith.mulf %213, %213 : vector<4x32xf32>
      %cst_144 = arith.constant dense<0.000000e+00> : vector<4xf32>
      %215 = vector.multi_reduction <add>, %214, %cst_144 [1] : vector<4x32xf32> to vector<4xf32>
      %216 = vector.shape_cast %215 : vector<4xf32> to vector<4x1xf32>
      %cst_145 = arith.constant 3.200000e+01 : f32
      %217 = vector.broadcast %cst_145 : f32 to vector<4x1xf32>
      %218 = arith.divf %216, %217 : vector<4x1xf32>
      %219 = vector.broadcast %211 : vector<4x1xf32> to vector<4x32xf32>
      %220 = arith.subf %207, %219 : vector<4x32xf32>
      %cst_146 = arith.constant 9.99999974E-6 : f32
      %221 = vector.broadcast %cst_146 : f32 to vector<4x1xf32>
      %222 = arith.addf %218, %221 : vector<4x1xf32>
      %223 = math.rsqrt %222 : vector<4x1xf32>
      %224 = vector.broadcast %223 : vector<4x1xf32> to vector<4x32xf32>
      %225 = arith.mulf %220, %224 : vector<4x32xf32>
      %c0_147 = arith.constant 0 : index
      %c0_148 = arith.constant 0 : index
      %226 = vector.load %arg10[%c0_147, %c0_148] : memref<1x32xf32, #tpu.memory_space<vmem>>, vector<1x32xf32>
      %227 = vector.broadcast %226 : vector<1x32xf32> to vector<4x32xf32>
      %228 = arith.mulf %225, %227 : vector<4x32xf32>
      %c0_149 = arith.constant 0 : index
      %c0_150 = arith.constant 0 : index
      %229 = vector.load %arg11[%c0_149, %c0_150] : memref<1x32xf32, #tpu.memory_space<vmem>>, vector<1x32xf32>
      %230 = vector.broadcast %229 : vector<1x32xf32> to vector<4x32xf32>
      %231 = arith.addf %228, %230 : vector<4x32xf32>
      %c0_151 = arith.constant 0 : index
      %c0_152 = arith.constant 0 : index
      %c0_153 = arith.constant 0 : index
      %232 = vector.load %arg12[%c0_151, %c0_152, %c0_153] : memref<1x4x32xf32, #tpu.memory_space<vmem>>, vector<1x4x32xf32>
      %233 = vector.shape_cast %232 : vector<1x4x32xf32> to vector<4x32xf32>
      %234 = vector.shape_cast %231 : vector<4x32xf32> to vector<1x4x32xf32>
      tpu.vector_store %arg12[%c0_151, %c0_152, %c0_153], %234 {strides = array<i32>} : memref<1x4x32xf32, #tpu.memory_space<vmem>>, vector<1x4x32xf32>,
    } else {
    }
    return
  }
  func.func @transform_0(%arg0: i32, %arg1: i32) -> (i32, i32, i32) {
    %c0_i32 = arith.constant 0 : i32
    %c0_i32_0 = arith.constant 0 : i32
    %c0_i32_1 = arith.constant 0 : i32
    %c0_i32_2 = arith.constant 0 : i32
    return %c0_i32, %c0_i32_0, %c0_i32_1 : i32, i32, i32
  }
  func.func @transform_1(%arg0: i32, %arg1: i32) -> (i32, i32, i32) {
    %c0_i32 = arith.constant 0 : i32
    %c0_i32_0 = arith.constant 0 : i32
    return %arg0, %arg1, %c0_i32 : i32, i32, i32
  }
  func.func @transform_2(%arg0: i32, %arg1: i32) -> (i32, i32) {
    %c0_i32 = arith.constant 0 : i32
    %c0_i32_0 = arith.constant 0 : i32
    %c0_i32_1 = arith.constant 0 : i32
    return %c0_i32, %c0_i32_0 : i32, i32
  }
  func.func @transform_3(%arg0: i32, %arg1: i32) -> (i32, i32) {
    %c0_i32 = arith.constant 0 : i32
    %c0_i32_0 = arith.constant 0 : i32
    %c0_i32_1 = arith.constant 0 : i32
    return %c0_i32, %c0_i32_0 : i32, i32
  }
  func.func @transform_4(%arg0: i32, %arg1: i32) -> (i32, i32) {
    %c0_i32 = arith.constant 0 : i32
    %c0_i32_0 = arith.constant 0 : i32
    %c0_i32_1 = arith.constant 0 : i32
    return %c0_i32, %c0_i32_0 : i32, i32
  }
  func.func @transform_5(%arg0: i32, %arg1: i32) -> (i32, i32) {
    %c0_i32 = arith.constant 0 : i32
    %c0_i32_0 = arith.constant 0 : i32
    %c0_i32_1 = arith.constant 0 : i32
    return %c0_i32, %c0_i32_0 : i32, i32
  }
  func.func @transform_6(%arg0: i32, %arg1: i32) -> (i32, i32) {
    %c0_i32 = arith.constant 0 : i32
    %c0_i32_0 = arith.constant 0 : i32
    %c0_i32_1 = arith.constant 0 : i32
    return %c0_i32, %c0_i32_0 : i32, i32
  }
  func.func @transform_7(%arg0: i32, %arg1: i32) -> (i32, i32) {
    %c0_i32 = arith.constant 0 : i32
    %c0_i32_0 = arith.constant 0 : i32
    %c0_i32_1 = arith.constant 0 : i32
    return %c0_i32, %c0_i32_0 : i32, i32
  }
  func.func @transform_8(%arg0: i32, %arg1: i32) -> (i32, i32) {
    %c0_i32 = arith.constant 0 : i32
    %c0_i32_0 = arith.constant 0 : i32
    %c0_i32_1 = arith.constant 0 : i32
    return %c0_i32, %c0_i32_0 : i32, i32
  }
  func.func @transform_9(%arg0: i32, %arg1: i32) -> (i32, i32) {
    %c0_i32 = arith.constant 0 : i32
    %c0_i32_0 = arith.constant 0 : i32
    %c0_i32_1 = arith.constant 0 : i32
    return %c0_i32, %c0_i32_0 : i32, i32
  }
  func.func @transform_10(%arg0: i32, %arg1: i32) -> (i32, i32, i32) {
    %c0_i32 = arith.constant 0 : i32
    %c0_i32_0 = arith.constant 0 : i32
    %c0_i32_1 = arith.constant 0 : i32
    return %arg0, %c0_i32, %c0_i32_0 : i32, i32, i32
  }
}

</mosaic_0001>

<bundles_post_ra>
// kernel: tpu_custom_call.1
= control target key start
LH: loop header
LB: loop body
LE: loop exit
PB: predicated region body
PF: predicated region fallthrough
CT: control target
= control target key end

     0   :  { %s2425_s0 = inlined_call_operand.hbm [shape: f32[1,4,32], index: 0, kind: input, shape index: {}]   ;;  %s2426_s1 = inlined_call_operand.hbm [shape: bf16[2,8,32], index: 1, kind: input, shape index: {}]   ;;  %s2427_s2 = inlined_call_operand.hbm [shape: bf16[32,32], index: 2, kind: input, shape index: {}]   ;;  %s2428_s3 = inlined_call_operand.vmem [shape: f32[1,32], index: 3, kind: input, shape index: {}]   ;;  %s2429_s4 = inlined_call_operand.hbm [shape: bf16[32,32], index: 4, kind: input, shape index: {}]   ;;  %s2430_s5 = inlined_call_operand.vmem [shape: f32[1,32], index: 5, kind: input, shape index: {}]   ;;  %s2431_s6 = inlined_call_operand.hbm [shape: bf16[32,32], index: 6, kind: input, shape index: {}]   ;;  %s2432_s7 = inlined_call_operand.vmem [shape: f32[1,32], index: 7, kind: input, shape index: {}]   ;;  %s2433_s8 = inlined_call_operand.vmem [shape: f32[1,32], index: 8, kind: input, shape index: {}]   ;;  %s2434_s9 = inlined_call_operand.vmem [shape: f32[1,32], index: 9, kind: input, shape index: {}]   ;;  %s2435_s10 = inlined_call_operand.hbm [shape: f32[2,4,32], index: 10, kind: output, shape index: {}]  }
   0x1   :  { %2439 = sst [smem:[#allocation24_spill]] %s2425_s0 }
   0x2   :  { %2440 = sst [smem:[#allocation25_spill]] %s2427_s2 }
   0x3   :  { %2441 = sst [smem:[#allocation26_spill]] %s2429_s4 }
   0x4   :  { %2442 = sst [smem:[#allocation27_spill]] %s2431_s6 }
   0x5   :  { %15 = vsyncpa [#allocation7], 0 }
   0x6   :  { %16 = vsyncpa [#allocation10], 0 }
   0x7   :  { %18 = vsyncpa [#allocation10 + $0x1], 0 }
   0x8   :  { %19 = vsyncpa [#allocation13], 0 }
   0x9   :  { %20 = vsyncpa [#allocation8], 0 }
   0xa   :  { %22 = vsyncpa [#allocation8 + $0x1], 0  ;;  %s2048_s13 = smov 0   ;;  %s2050_s14 = smov 0  }
   0xb   :  { %s2052_s15 = smov 0   ;;  %s2054_s16 = smov 0  }
   0xc   :  { %s2056_s17 = smov 0   ;;  %s2058_s18 = smov 0  }
   0xd LB: > { %2443 = sst [smem:[#allocation21_spill]] %s1968_s17  ;;  %s1974_s19 = smov [#allocation11]   ;;  %s1972_s18 = sphi %s2058_s18, %s28_s18   ;;  %s1968_s17 = sphi %s2056_s17, %s2468_s17   ;;  %s1964_s16 = sphi %s2054_s16, %s2467_s16   ;;  %s1960_s15 = sphi %s2052_s15, %s2471_s15   ;;  %s1956_s14 = sphi %s2050_s14, %s2470_s14   ;;  %s1952_s13 = sphi %s2048_s13, %s2469_s13  }
   0xe   : > { %s311_s20 = sshll.u32 %s1974_s19, 4  ;;  %s2079_s21 = sadd.s32 4294967295, %s1972_s18   ;;  %s312_s20 = int_to_ptr.vmem [resolvable:$true] %s311_s20 }
   0xf   : > { %p1460_p0 = scmp.ge.s32.totalorder %s1972_s18, 1  ;;  %p2436_p1 = scmp.eq.s32.totalorder %s2079_s21, 0 }
  0x10   : > { %p288_p3 = scmp.lt.s32.totalorder %s1972_s18, 3  ;;  %s1975_s23 = smov [#allocation12]  }
  0x11   : > { %s327_s24 = sshll.u32 %s1975_s23, 4  ;;  %s1976_s26 = smov [#allocation6]   ;;  %s2092_s24 = int_to_ptr.vmem [resolvable:$true] %s327_s24 }
  0x12   : > { %p2085_p4 = pnand %p1460_p0, %p288_p3  ;;  %s301_s27 = sshll.u32 %s1976_s26, 4  ;;  %s302_s27 = int_to_ptr.vmem [resolvable:$true] %s301_s27 }
  0x13   : > { %s1759_s28 = scalar_lea.vmem %s312_s20, 256  ;;  %p1767_p12 = scmp.lt.s32.totalorder %s312_s20, %s312_s20 }
  0x14   : > { %p1618_p6 = pneg %p2085_p4  ;;  %p1760_p9 = scmp.ne.s32.totalorder %s312_s20, %s1759_s28 }
  0x15   : > { %p1768_p13 = scmp.lt.s32.totalorder %s1759_s28, %s1759_s28 }
  0x16   : > { %p2096_p7 = pnand %p1618_p6, %p2436_p1 }
  0x17   : > { %p1769_p0 = por %p1768_p13, %p1767_p12 }
  0x18   : > { %p1750_p8 = pneg %p2096_p7 }
  0x1a   : > { %p1762_p10 = pnand %p1760_p9, %p1750_p8 }
  0x1c   : > { %p1763_p11 = pneg %p1762_p10 }
  0x1e   : > { %p1770_p3 = pnand %p1769_p0, %p1763_p11 }
  0x20   : > { %1773 = shalt.err (!%p1770_p3)
}
  0x21   : > { %s1977_s29 = smov 64   ;;  %s1978_s30 = smov 4  }
  0x22   : > { %s2446_s2 = sld [smem:[#allocation25_spill]]  ;;  %s1785_s19 = scalar_lea.vmem %s2092_s24, 256 }
  0x23   : > { %p1786_p6 = scmp.ne.s32.totalorder %s2092_s24, %s1785_s19  ;;  %p1793_p11 = scmp.lt.s32.totalorder %s2092_s24, %s2092_s24 }
  0x24   : > { %p1794_p12 = scmp.lt.s32.totalorder %s1785_s19, %s1785_s19 }
  0x25   : > { %p1788_p9 = pnand %p1786_p6, %p1750_p8 }
  0x26   : > { %p1795_p13 = por %p1794_p12, %p1793_p11 }
  0x27   : > { %p1789_p10 = pneg %p1788_p9 }
  0x28   : > { %1624 = dma.hbm_to_vmem [thread:$0]  (!%p2096_p7), %s2446_s2, 256, %s312_s20, [#allocation10], %s1977_s29, %s1977_s29, %s1978_s30  }
  0x29   : > { %p1796_p0 = pnand %p1795_p13, %p1789_p10 }
  0x2b   : > { %1799 = shalt.err (!%p1796_p0)
}
  0x2c   : > { %s2447_s4 = sld [smem:[#allocation26_spill]]  ;;  %s1979_s26 = smov [#allocation14]  }
  0x2d   : > { %s343_s28 = sshll.u32 %s1979_s26, 4  ;;  %s1811_s11 = scalar_lea.vmem %s302_s27, 64  ;;  %s344_s28 = int_to_ptr.vmem [resolvable:$true] %s343_s28 }
  0x2e   : > { %p1812_p3 = scmp.ne.s32.totalorder %s302_s27, %s1811_s11  ;;  %p1819_p10 = scmp.lt.s32.totalorder %s302_s27, %s302_s27 }
  0x2f   : > { %p1820_p11 = scmp.lt.s32.totalorder %s1811_s11, %s1811_s11 }
  0x30   : > { %p1814_p6 = pnand %p1812_p3, %p1750_p8 }
  0x31   : > { %p1821_p12 = por %p1820_p11, %p1819_p10 }
  0x32   : > { %1627 = dma.hbm_to_vmem [thread:$0]  (!%p2096_p7), %s2447_s4, 256, %s2092_s24, [#allocation13], %s1977_s29, %s1977_s29, %s1978_s30  }
  0x33   : > { %p1815_p9 = pneg %p1814_p6 }
  0x35   : > { %p1822_p13 = pnand %p1821_p12, %p1815_p9 }
  0x37   : > { %1825 = shalt.err (!%p1822_p13)
}
  0x38   : > { %s2448_s0 = sld [smem:[#allocation24_spill]]  ;;  %s1837_s24 = scalar_lea.vmem %s344_s28, 256 }
  0x39   : > { %p1838_p0 = scmp.ne.s32.totalorder %s344_s28, %s1837_s24  ;;  %p1845_p6 = scmp.lt.s32.totalorder %s344_s28, %s344_s28 }
  0x3a   : > { %p1846_p2 = scmp.lt.s32.totalorder %s1837_s24, %s1837_s24 }
  0x3b   : > { %p1840_p5 = pnand %p1838_p0, %p1750_p8 }
  0x3c   : > { %p1847_p1 = por %p1846_p2, %p1845_p6 }
  0x3d   : > { %p1841_p3 = pneg %p1840_p5 }
  0x3e   : > { %1621 = dma.hbm_to_vmem [thread:$0]  (!%p2096_p7), %s2448_s0, 64, %s302_s27, [#allocation7]  }
  0x3f   : > { %p1848_p10 = pnand %p1847_p1, %p1841_p3 }
  0x41   : > { %1851 = shalt.err (!%p1848_p10)
}
  0x42   : > { %s2449_s6 = sld [smem:[#allocation27_spill]]  ;;  %s1459_s25 = sadd.s32 4294967294, %s1972_s18  }
  0x43   : > { %s40_s27 = sadd.s32 1, %s1968_s17  ;;  %s70_s26 = sadd.s32 1, %s1960_s15 }
  0x44   : > { %p42_p1 = scmp.ge.s32.totalorder %s40_s27, 2  ;;  %p77_p2 = scmp.ne.s32.totalorder %s1960_s15, %s1956_s14 }
  0x45   : > { %p78_p5 = scmp.eq.s32.totalorder %s1972_s18, 0  ;;  %p83_p8 = scmp.ne.s32.totalorder %s1956_s14, %s1952_s13 }
  0x46   : > { %s2473_s27 = smov (%p42_p1, %s40_s27), 0  ;;  %p2452_p11 = scmp.eq.s32.totalorder %s2079_s21, 0 }
  0x47   : > { %2450 = sst [smem:[#allocation22_spill]] %s2473_s27  ;;  %p2158_p9 = por %p78_p5, %p77_p2 }
  0x48   : > { %1630 = dma.hbm_to_vmem [thread:$0]  (!%p2096_p7), %s2449_s6, 256, %s344_s28, [#allocation13], %s1977_s29, %s1977_s29, %s1978_s30  }
  0x49   : > { %p2164_p7 = por %p2452_p11, %p83_p8  ;;  %s65_s30 = ssub.s32 %s1968_s17, %s2473_s27 }
  0x4a   : > { %p2454_p12 = scmp.eq.s32.totalorder %s2079_s21, 1  ;;  %p68_p0 = scmp.eq.s32.totalorder %s65_s30, 0 }
  0x4b   : > { %p281_p3 = scmp.eq.s32.totalorder %s1459_s25, 1  ;;  %p1643_p6 = scmp.lt.s32.totalorder %s1972_s18, 2 }
  0x4c   : > { %p2172_p13 = por %p2454_p12, %p77_p2  ;;  %s366_s12 = sand.u32 1, %s1972_s18  }
  0x4d   : > { %s2179_s19 = scalar_select %p68_p0, %s1960_s15, %s70_s26  }
  0x4e   : > { %p2181_p10 = por %p281_p3, %p83_p8  ;;  %s368_s23 = sand.u32 1, %s1960_s15  }
  0x4f   : > { %2456 = sst [smem:[#allocation23_spill]] %s2179_s19  ;;  %s1467_s20 = sshll.u32 %s1968_s17, 6 }
  0x50   : > { %s1466_s0 = sshll.u32 %s368_s23, 2  ;;  %s376_s6 = scalar_lea.hbm %s2426_s1, %s1467_s20 }
  0x51   : > { %p2192_p1 = pnand %p1643_p6, %p2158_p9  ;;  %s370_s25 = scalar_lea.vmem [#allocation9], %s1466_s0 }
  0x52   : > { %s378_s26 = sshll.u32 %s370_s25, 4  ;;  %s367_s30 = scalar_lea.sflag [#allocation10], %s366_s12  ;;  %s379_s26 = int_to_ptr.vmem [resolvable:$true] %s378_s26 }
  0x53   : > { %p1854_p2 = pneg %p2192_p1  ;;  %s1865_s19 = scalar_lea.vmem %s379_s26, 64 }
  0x54   : > { %p1866_p5 = scmp.ne.s32.totalorder %s379_s26, %s1865_s19  ;;  %s1980_s23 = smov [#allocation9]  }
  0x55   : > { %s1870_s17 = sshll.u32 %s1980_s23, 4  ;;  %s1871_s17 = int_to_ptr.vmem [resolvable:$false] %s1870_s17 }
  0x56   : > { %p1868_p8 = pnand %p1866_p5, %p1854_p2  ;;  %s1872_s2 = scalar_lea.vmem %s1871_s17, 128 }
  0x57   : > { %p1873_p12 = scmp.lt.s32.totalorder %s379_s26, %s1871_s17  ;;  %p1874_p9 = scmp.lt.s32.totalorder %s1872_s2, %s1865_s19 }
  0x58   : > { %p1869_p11 = pneg %p1868_p8 }
  0x59   : > { %p1875_p0 = por %p1874_p9, %p1873_p12 }
  0x5b   : > { %p1876_p3 = pnand %p1875_p0, %p1869_p11 }
  0x5d   : > { %1879 = shalt.err (!%p1876_p3)
}
  0x5e   : > { %1634 = dma.hbm_to_vmem [thread:$0]  (!%p2192_p1), %s376_s6, 64, %s379_s26, %s367_s30  }
  0x5f   : > { %387 = sbr.rel (%p2085_p4) target bundleno = 1669 (0x685), region = 60  ;;  %p2459_p6 = scmp.eq.s32.totalorder (!%p2085_p4), %s2079_s21, 0 }
  0x64   : > { %1931 = dma.done.wait (%p2459_p6), [#allocation7], 64   ;;  %p2460_p2 = pmov %p2459_p6 }
  0x65   : > { %s393_s0 = sand.u32 1, %s2079_s21   ;;  %s395_s4 = sand.u32 1, %s1956_s14  }
  0x66   : > { %1933 = vsyncadd (%p2460_p2), [#allocation7], 4294967232  ;;  %s2210_s17 = sshll.u32 %s395_s4, 2  ;;  %s394_s6 = scalar_lea.sflag [#allocation10], %s393_s0 }
  0x67   : > { %s397_s27 = scalar_lea.vmem [#allocation9], %s2210_s17 }
  0x68   : > { %1935 = dma.done.wait (%p2164_p7), %s394_s6, 64  }
  0x69   : > { %1937 = vsyncadd (%p2164_p7), %s394_s6, 4294967232  ;;  %p2461_p4 = pmov %p2460_p2 }
  0x6a   : > { %p2462_p1 = pmov %p2460_p2 }
  0x6b   : > { %1939 = dma.done.wait (%p2461_p4), [#allocation10], 256  }
  0x6c   : > { %1941 = vsyncadd (%p2462_p1), [#allocation10], 4294967040  ;;  %p2463_p5 = pmov %p2462_p1 }
  0x6d   : > { %p2464_p8 = pmov %p2462_p1 }
  0x6e   : > { %1943 = dma.done.wait (%p2463_p5), [#allocation13], 512  }
  0x6f   : > { %1945 = vsyncadd (%p2464_p8), [#allocation13], 4294966784  ;;  %v1981_v0 = vmov 0.0   ;;  %vm1982_vm0 = vmmov 0   ;;  %v1716_v1 = vld [vmem:[#allocation11 + $0x8] sm:$0xff]   ;;  %v1717_v2 = vld [vmem:[#allocation12 + $0x8] sm:$0xff]   ;;  %v527_v10 = vlaneseq }
  0x70   : > { %1526 = vmatprep.subr.bf16.mxu0 %v1981_v0  ;;  %1534 = vmatprep.subr.bf16.mxu1 %v1981_v0  ;;  %v1718_v3 = vld [vmem:[#allocation11] sm:$0xff]   ;;  %v1719_v4 = vld [vmem:[#allocation12] sm:$0xff]   ;;  %vm476_vm1 = vcmask 261120   ;;  %v560_v7 = vld [vmem:[%s397_s27] sm:$0xf]  ;;  %vm521_vm2 = vcmask 58368  }
  0x71   : > { %1530 = vmatprep.mubr.msk.bf16.mxu0 %vm1982_vm0, %v1981_v0  ;;  %1538 = vmatprep.mubr.msk.bf16.mxu1 %vm1982_vm0, %v1981_v0  ;;  %v451_v5 = vld [vmem:[#allocation6] sm:$0xf]  ;;  %v1983_v8 = vmov 1983009808   ;;  %v528_v12 = vshrl.u32 %v527_v10, 7  ;;  %vm694_vm3 = vcmask 64512  }
  0x72   : > { %1527 = vmatpush3.bf16.msra.mxu0 %v1716_v1  ;;  %1535 = vmatpush3.bf16.msra.mxu1 %v1717_v2  ;;  %v452_v6 = vpack.c.bf16 %v451_v5, %v451_v5  ;;  %v525_v9 = vunpack.c.l.s4 %v1983_v8  ;;  %v1475_v13 = vld [vmem:[%s2428_s3] ss:$0 sm:$0xff]  ;;  %s1984_s12 = smov 112   ;;  %s1985_s19 = smov 120   ;;  %vm555_vm4 = vcmask 60416   ;;  %v1720_v31 = vld [vmem:[#allocation14 + $0x8] sm:$0xff]  }
  0x73   : > { %1528 = vmatprep.subr.bf16.mxu0 %v1981_v0  ;;  %1536 = vmatprep.subr.bf16.mxu1 %v1981_v0  ;;  %v1479_v14 = vld [vmem:[%s2430_s5] ss:$0 sm:$0xff]  ;;  %s1986_s20 = smov 104   ;;  %556 = vst.msk [vmem:[#allocation5] sm:$0xf] %vm555_vm4, %v1981_v0  ;;  %v1721_v32 = vld [vmem:[#allocation14] sm:$0xff]  }
  0x74   : > { %v526_v11 = vunpack.c.0.s8 %v525_v9  ;;  %557 = vst.msk [vmem:[#allocation5 + $0x4] sm:$0xf] %vm555_vm4, %v1981_v0  ;;  %558 = vst.msk [vmem:[#allocation5 + $0x8] sm:$0xf] %vm555_vm4, %v1981_v0  ;;  %vm546_vm5 = vcmask 3072   ;;  %v1988_v52 = vmov 0  }
  0x75   : > { %559 = vst.msk [vmem:[#allocation5 + $0xc] sm:$0xf] %vm555_vm4, %v1981_v0  ;;  %v1987_v51 = vmov -1e+30   ;;  %1714 = vset.pattern.permute.xlu1 %v1988_v52  ;;  %1715 = vset.pattern.permute.xlu0 %v1988_v52  ;;  %vm778_vm6 = vcmask 1043456   ;;  %s1989_s30 = smov 8  }
  0x76   : > { %1529 = vmatpush3.bf16.msra.mxu0 %v1718_v3  ;;  %1537 = vmatpush3.bf16.msra.mxu1 %v1719_v4  ;;  %v529_v17 = vsub.s32 %v526_v11, %v528_v12  ;;  %547 = vst.msk [vmem:[#allocation3] sm:$0xf] %vm546_vm5, %v1987_v51  ;;  %548 = vst.msk [vmem:[#allocation3 + $0x4] sm:$0xf] %vm546_vm5, %v1987_v51  ;;  %v1483_v12 = vld [vmem:[%s2432_s7] ss:$0 sm:$0xff] }
  0x77   : > { %1542 = vmatprep.subr.bf16.mxu0 %v1981_v0  ;;  %1550 = vmatprep.subr.bf16.mxu1 %v1981_v0  ;;  %549 = vst.msk [vmem:[#allocation3 + $0x8] sm:$0xf] %vm546_vm5, %v1987_v51  ;;  %550 = vst.msk [vmem:[#allocation3 + $0xc] sm:$0xf] %vm546_vm5, %v1987_v51  ;;  %s1990_s23 = smov 16   ;;  %s1991_s2 = smov 24  }
  0x78   : > { %551 = vst.msk [vmem:[#allocation4] sm:$0xf] %vm546_vm5, %v1981_v0  ;;  %552 = vst.msk [vmem:[#allocation4 + $0x4] sm:$0xf] %vm546_vm5, %v1981_v0  ;;  %vm1287_vm7 = vcmask 130048   ;;  %vm1289_vm8 = vcmask 195584  }
  0x79   : > { %1531 = vmatmul.mubr.msk.bf16.vlgmr.msra.gmra.mxu0 %vm476_vm1, %v452_v6  ;;  %1539 = vmatmul.mubr.msk.bf16.vlgmr.msra.gmra.mxu1 %vm476_vm1, %v560_v7  ;;  %553 = vst.msk [vmem:[#allocation4 + $0x8] sm:$0xf] %vm546_vm5, %v1981_v0  ;;  %554 = vst.msk [vmem:[#allocation4 + $0xc] sm:$0xf] %vm546_vm5, %v1981_v0  ;;  %vm1293_vm9 = vcmask 257024   ;;  %s1498_s22 = sshll.u32 %s1964_s16, 6 }
  0x7a   : > { %1546 = vmatprep.mubr.msk.bf16.mxu0 %vm1982_vm0, %v1981_v0  ;;  %1552 = vmatprep.mubr.msk.bf16.mxu1 %vm1982_vm0, %v1981_v0  ;;  %s445_s11 = scalar_lea.vmem [#allocation15], %s2210_s17  ;;  %s1326_s25 = scalar_lea.sflag [#allocation8], %s395_s4 }
  0x7b   : > { %1543 = vmatpush3.bf16.msra.mxu0 %v1720_v31  ;;  %s1339_s29 = sshll.u32 %s445_s11, 4  ;;  %s1340_s29 = int_to_ptr.vmem [resolvable:$true] %s1339_s29 }
  0x7c   : > { %1544 = vmatprep.subr.bf16.mxu0 %v1981_v0  ;;  %s1880_s26 = scalar_lea.vmem %s1340_s29, 64 }
  0x7d   : > { %v2313_v5 = vld [vmem:[#allocation3] sm:$0xf]  ;;  %p1881_p7 = scmp.ne.s32.totalorder %s1340_s29, %s1880_s26 }
  0x7e   : > { %v1151_v31 = vld [vmem:[#allocation3 + $0xc] sm:$0xf] }
  0x7f   : > { %1545 = vmatpush3.bf16.msra.mxu0 %v1721_v32  ;;  %p1882_p11 = pnand %p1881_p7, %p2172_p13 }
  0x80   : > { %1556 = vmatprep.subr.bf16.mxu0 %v1981_v0 }
  0x81   : > { %p1883_p12 = pneg %p1882_p11 }
  0x82   : > { %1547 = vmatmul.mubr.msk.bf16.vlgmr.msra.gmra.mxu0 %vm476_vm1, %v560_v7 }
  0x83   : > { %1558 = vmatprep.mubr.msk.bf16.mxu0 %vm1982_vm0, %v1981_v0 }
 0x139   : > { %v514_v15 = vpop.f32.mrf.mxu0  ;;  %v622_v18 = vpop.f32.mrf.mxu1 }
 0x13a   : > { %v515_v16 = vadd.f32 %v1475_v13, %v514_v15  ;;  %v623_v19 = vadd.f32 %v1479_v14, %v622_v18 }
 0x13b   : > { %v1532_v20 = vpop.f32.mrf.mxu0  ;;  %v1540_v22 = vpop.f32.mrf.mxu1 }
 0x13c   : > { %v520_v21 = vpack.c.bf16 %v515_v16, %v515_v16  ;;  %v628_v23 = vpack.c.bf16 %v623_v19, %v623_v19  ;;  %v878_v20 = vld [vmem:[#allocation3 + $0x4] sm:$0xf] }
 0x13d   : > { %v517_v24 = vpop.f32.mrf.mxu0  ;;  %v625_v26 = vpop.f32.mrf.mxu1 }
 0x13e   : > { %522 = vst.msk [vmem:[#allocation2] sm:$0x3] %vm521_vm2, %v520_v21  ;;  %v530_v25 = vrot.slane %v520_v21, %v529_v17  ;;  %v699_v28 = vsel %vm694_vm3, %v628_v23, 0  ;;  %v1015_v26 = vld [vmem:[#allocation3 + $0x8] sm:$0xf] }
 0x13f   : > { %v1533_v27 = vpop.f32.mrf.mxu0  ;;  %v1541_v29 = vpop.f32.mrf.mxu1  ;;  %1551 = vmatpush3.bf16.xpose.msra.mxu1 %v699_v28 }
 0x140   : > { %536 = vrot.lane.b32.xlu1 %v530_v25, %s1984_s12  ;;  %531 = vrot.lane.b32.xlu0 %v530_v25, %s1985_s19 }
 0x141   : > { %1562 = vmatprep.subr.bf16.mxu1 %v1981_v0 }
 0x142   : > { %v686_v13 = vpop.f32.mrf.mxu0 }
 0x143   : > { %v687_v14 = vadd.f32 %v1483_v12, %v686_v13 }
 0x144   : > { %965 = vrot.lane.b32.xlu1 %v628_v23, %s1984_s12  ;;  %828 = vrot.lane.b32.xlu0 %v628_v23, %s1985_s19  ;;  %v1548_v15 = vpop.f32.mrf.mxu0 }
 0x145   : > { %v693_v30 = vld [vmem:[#allocation2] sm:$0x3]  ;;  %v692_v16 = vpack.c.bf16 %v687_v14, %v687_v14 }
 0x146   : > { %1553 = vmatmul.mubr.msk.bf16.vlgmr.msra.gmra.mxu1 %vm694_vm3, %v693_v30  ;;  %v689_v17 = vpop.f32.mrf.mxu0 }
 0x147   : > { %1564 = vmatprep.mubr.msk.bf16.mxu1 %vm1982_vm0, %v1981_v0  ;;  %v780_v18 = vsel %vm778_vm6, %v692_v16, 0 }
 0x148   : > { %1101 = vrot.lane.b32.xlu1 %v628_v23, %s1986_s20  ;;  %541 = vrot.lane.b32.xlu0 %v530_v25, %s1986_s20  ;;  %v1549_v19 = vpop.f32.mrf.mxu0 }
 0x149   : > { %1557 = vmatpush3.bf16.msra.mxu0 %v780_v18 }
 0x14a   : > { %1568 = vmatprep.subr.bf16.mxu0 %v1981_v0 }
 0x1b2   : > { %v537_v33 = vpop.permute.xlu1 %536  ;;  %v532_v34 = vpop.permute.xlu0 %531 }
 0x1b3   : > { %540 = vst.msk [vmem:[#allocation2 + $0x4] sm:$0x3] %vm521_vm2, %v537_v33  ;;  %535 = vst.msk [vmem:[#allocation2 + $0x2] sm:$0x3] %vm521_vm2, %v532_v34 }
 0x1b6   : > { %v829_v35 = vpop.permute.xlu0 %828  ;;  %v966_v38 = vpop.permute.xlu1 %965 }
 0x1b7   : > { %v834_v36 = vsel %vm694_vm3, %v829_v35, 0  ;;  %v971_v40 = vsel %vm694_vm3, %v966_v38, 0 }
 0x1b8   : > { %1563 = vmatpush3.bf16.xpose.msra.mxu1 %v834_v36 }
 0x1b9   : > { %1574 = vmatprep.subr.bf16.mxu1 %v1981_v0 }
 0x1ba   : > { %v542_v37 = vpop.permute.xlu0 %541  ;;  %v826_v39 = vld [vmem:[#allocation2 + $0x2] sm:$0x3]  ;;  %v1102_v41 = vpop.permute.xlu1 %1101  ;;  %v964_v42 = vld [vmem:[#allocation2 + $0x4] sm:$0x3] }
 0x1bb   : > { %545 = vst.msk [vmem:[#allocation2 + $0x6] sm:$0x3] %vm521_vm2, %v542_v37  ;;  %v1107_v43 = vsel %vm694_vm3, %v1102_v41, 0 }
 0x1bf   : > { %1565 = vmatmul.mubr.msk.bf16.vlgmr.msra.gmra.mxu1 %vm694_vm3, %v826_v39 }
 0x1c0   : > { %1575 = vmatpush3.bf16.xpose.msra.mxu1 %v971_v40  ;;  %1576 = vmatprep.mubr.msk.bf16.mxu1 %vm1982_vm0, %v1981_v0 }
 0x1c1   : > { %1586 = vmatprep.subr.bf16.mxu1 %v1981_v0 }
 0x1c2   : > { %v1100_v44 = vld [vmem:[#allocation2 + $0x6] sm:$0x3] }
 0x1c7   : > { %1577 = vmatmul.mubr.msk.bf16.vlgmr.msra.gmra.mxu1 %vm694_vm3, %v964_v42 }
 0x1c8   : > { %1587 = vmatpush3.bf16.xpose.msra.mxu1 %v1107_v43  ;;  %1588 = vmatprep.mubr.msk.bf16.mxu1 %vm1982_vm0, %v1981_v0 }
 0x1cf   : > { %1589 = vmatmul.mubr.msk.bf16.vlgmr.msra.gmra.mxu1 %vm694_vm3, %v1100_v44 }
 0x206   : > { %v735_v45 = vpop.f32.mrf.mxu1 }
 0x207   : > { %v2287_v46 = vmul.f32 0.35355338, %v735_v45 }
 0x208   : > { %v1554_v47 = vpop.f32.mrf.mxu1 }
 0x209   : > { %v744_v48 = vsel %vm555_vm4, %v2287_v46, -inf }
 0x20a   : > { %745 = vmax.xlane.f32.xlu0 %v744_v48  ;;  %v738_v49 = vpop.f32.mrf.mxu1 }
 0x20c   : > { %v1555_v50 = vpop.f32.mrf.mxu1 }
 0x27f   : > { %v870_v53 = vpop.f32.mrf.mxu1 }
 0x280   : > { %v2303_v54 = vmul.f32 0.35355338, %v870_v53 }
 0x281   : > { %v1566_v55 = vpop.f32.mrf.mxu1 }
 0x282   : > { %v879_v56 = vsel %vm555_vm4, %v2303_v54, -inf }
 0x283   : > { %880 = vmax.xlane.f32.xlu1 %v879_v56  ;;  %v873_v57 = vpop.f32.mrf.mxu1 }
 0x285   : > { %v1567_v58 = vpop.f32.mrf.mxu1 }
 0x287   : > { %v1007_v59 = vpop.f32.mrf.mxu1 }
 0x288   : > { %v2307_v60 = vmul.f32 0.35355338, %v1007_v59 }
 0x289   : > { %v1578_v61 = vpop.f32.mrf.mxu1 }
 0x28a   : > { %v1016_v62 = vsel %vm555_vm4, %v2307_v60, -inf }
 0x28b   : > { %1017 = vmax.xlane.f32.xlu0 %v1016_v62  ;;  %v1010_v63 = vpop.f32.mrf.mxu1 }
 0x28d   : > { %v1579_v1 = vpop.f32.mrf.mxu1 }
 0x28f   : > { %v1143_v2 = vpop.f32.mrf.mxu1 }
 0x290   : > { %v2311_v3 = vmul.f32 0.35355338, %v1143_v2 }
 0x291   : > { %v1590_v4 = vpop.f32.mrf.mxu1 }
 0x292   : > { %v1152_v6 = vsel %vm555_vm4, %v2311_v3, -inf }
 0x293   : > { %v746_v7 = vpop.xlane.xlu0 %745  ;;  %1153 = vmax.xlane.f32.xlu0 %v1152_v6  ;;  %v1146_v8 = vpop.f32.mrf.mxu1 }
 0x294   : > { %v2318_v9 = vmax.f32 %v2313_v5, %v746_v7 }
 0x295   : > { %v1591_v10 = vpop.f32.mrf.mxu1 }
 0x296   : > { %v748_v11 = vsub.f32 %v2313_v5, %v2318_v9  ;;  %824 = vst.msk [vmem:[#allocation3] sm:$0xf] %vm546_vm5, %v2318_v9  ;;  %753 = vperm.xlu1 %1714, %v2318_v9   ;;  %v895_v10 = vld [vmem:[#allocation4 + $0x4] sm:$0xf]  ;;  %v759_v5 = vld [vmem:[#allocation4] sm:$0xf] }
 0x298   : > { %v749_v12 = vmul.f32 1.442695, %v748_v11 }
 0x30c   : > { %v881_v21 = vpop.xlane.xlu1 %880 }
 0x30d   : > { %v882_v22 = vmax.f32 %v878_v20, %v881_v21  ;;  %v1168_v21 = vld [vmem:[#allocation4 + $0xc] sm:$0xf] }
 0x30f   : > { %v883_v23 = vsub.f32 %v878_v20, %v882_v22  ;;  %962 = vst.msk [vmem:[#allocation3 + $0x4] sm:$0xf] %vm546_vm5, %v882_v22  ;;  %888 = vperm.xlu0 %1715, %v882_v22  }
 0x311   : > { %v754_v24 = vpop.permute.xlu1 %753  ;;  %v884_v58 = vmul.f32 1.442695, %v883_v23 }
 0x312   : > { %v756_v25 = vsub.f32 %v2287_v46, %v754_v24 }
 0x314   : > { %v757_v27 = vmul.f32 1.442695, %v756_v25  ;;  %v1018_v28 = vpop.xlane.xlu0 %1017 }
 0x315   : > { %v1019_v29 = vmax.f32 %v1015_v26, %v1018_v28 }
 0x316   : > { %1722 = vpow2.f32 %v757_v27 }
 0x317   : > { %v1020_v30 = vsub.f32 %v1015_v26, %v1019_v29  ;;  %1098 = vst.msk [vmem:[#allocation3 + $0x8] sm:$0xf] %vm546_vm5, %v1019_v29  ;;  %1025 = vperm.xlu1 %1714, %v1019_v29  }
 0x319   : > { %v1021_v61 = vmul.f32 1.442695, %v1020_v30 }
 0x31c   : > { %v1154_v32 = vpop.xlane.xlu0 %1153 }
 0x31d   : > { %v1155_v33 = vmax.f32 %v1151_v31, %v1154_v32 }
 0x31f   : > { %v1156_v34 = vsub.f32 %v1151_v31, %v1155_v33  ;;  %1234 = vst.msk [vmem:[#allocation3 + $0xc] sm:$0xf] %vm546_vm5, %v1155_v33  ;;  %1161 = vperm.xlu1 %1714, %v1155_v33  }
 0x321   : > { %v1157_v1 = vmul.f32 1.442695, %v1156_v34  ;;  %v903_v34 = vld [vmem:[#allocation5 + $0x4] sm:$0xf] }
 0x323   : > { %v1723_v35 = vpop.eup %1722  ;;  %912 = vrot.lane.b32.xlu1 %v692_v16, %s1985_s19 }
 0x324   : > { %v774_v36 = vpack.c.bf16 %v1723_v35, %v1723_v35  ;;  %v761_v62 = vsel %vm555_vm4, %v1723_v35, 0.0 }
 0x326   : > { %1559 = vmatmul.mubr.msk.bf16.vlgmr.msra.gmra.mxu0 %vm694_vm3, %v774_v36 }
 0x327   : > { %1048 = vrot.lane.b32.xlu1 %v692_v16, %s1984_s12  ;;  %1570 = vmatprep.mubr.msk.bf16.mxu0 %vm1982_vm0, %v1981_v0 }
 0x32b   : > { %1184 = vrot.lane.b32.xlu1 %v692_v16, %s1986_s20  ;;  %v1032_v16 = vld [vmem:[#allocation4 + $0x8] sm:$0xf]  ;;  %s1337_s20 = scalar_lea.hbm %s2435_s10, %s1498_s22 }
 0x38a   : > { %v889_v37 = vpop.permute.xlu0 %888 }
 0x38b   : > { %v891_v38 = vsub.f32 %v2303_v54, %v889_v37 }
 0x38d   : > { %v892_v39 = vmul.f32 1.442695, %v891_v38 }
 0x38f   : > { %1724 = vpow2.f32 %v892_v39 }
 0x392   : > { %v1026_v40 = vpop.permute.xlu1 %1025 }
 0x393   : > { %v1028_v41 = vsub.f32 %v2307_v60, %v1026_v40  ;;  %v1040_v40 = vld [vmem:[#allocation5 + $0x8] sm:$0xf] }
 0x395   : > { %v1029_v42 = vmul.f32 1.442695, %v1028_v41 }
 0x397   : > { %1726 = vpow2.f32 %v1029_v42 }
 0x39a   : > { %v1162_v43 = vpop.permute.xlu1 %1161 }
 0x39b   : > { %v1164_v44 = vsub.f32 %v2311_v3, %v1162_v43 }
 0x39c   : > { %v1725_v45 = vpop.eup %1724 }
 0x39d   : > { %v1165_v46 = vmul.f32 1.442695, %v1164_v44  ;;  %v897_v47 = vsel %vm555_vm4, %v1725_v45, 0.0  ;;  %v910_v50 = vpack.c.bf16 %v1725_v45, %v1725_v45 }
 0x39e   : > { %898 = vadd.xlane.f32.xlu1 %v897_v47  ;;  %v913_v48 = vpop.permute.xlu1 %912 }
 0x39f   : > { %1728 = vpow2.f32 %v1165_v46  ;;  %v918_v49 = vsel %vm778_vm6, %v913_v48, 0  ;;  %v1176_v48 = vld [vmem:[#allocation5 + $0xc] sm:$0xf] }
 0x3a0   : > { %1569 = vmatpush3.bf16.msra.mxu0 %v918_v49  ;;  %1730 = vpow2.f32 %v884_v58 }
 0x3a1   : > { %1580 = vmatprep.subr.bf16.mxu0 %v1981_v0  ;;  %1732 = vpow2.f32 %v1021_v61 }
 0x3a2   : > { %v1049_v51 = vpop.permute.xlu1 %1048  ;;  %1734 = vpow2.f32 %v1157_v1  ;;  %v767_v1 = vld [vmem:[#allocation5] sm:$0xf] }
 0x3a3   : > { %1571 = vmatmul.mubr.msk.bf16.vlgmr.msra.gmra.mxu0 %vm694_vm3, %v910_v50  ;;  %v1054_v52 = vsel %vm778_vm6, %v1049_v51, 0  ;;  %1736 = vpow2.f32 %v749_v12 }
 0x3a4   : > { %v1727_v53 = vpop.eup %1726  ;;  %1581 = vmatpush3.bf16.msra.mxu0 %v1054_v52  ;;  %1582 = vmatprep.mubr.msk.bf16.mxu0 %vm1982_vm0, %v1981_v0 }
 0x3a5   : > { %v1034_v54 = vsel %vm555_vm4, %v1727_v53, 0.0  ;;  %1592 = vmatprep.subr.bf16.mxu0 %v1981_v0  ;;  %v1047_v56 = vpack.c.bf16 %v1727_v53, %v1727_v53 }
 0x3a6   : > { %1035 = vadd.xlane.f32.xlu0 %v1034_v54  ;;  %v1185_v55 = vpop.permute.xlu1 %1184 }
 0x3a7   : > { %v1190_v57 = vsel %vm778_vm6, %v1185_v55, 0 }
 0x3ab   : > { %1583 = vmatmul.mubr.msk.bf16.vlgmr.msra.gmra.mxu0 %vm694_vm3, %v1047_v56 }
 0x3ac   : > { %v1729_v59 = vpop.eup %1728  ;;  %1593 = vmatpush3.bf16.msra.mxu0 %v1190_v57  ;;  %1594 = vmatprep.mubr.msk.bf16.mxu0 %vm1982_vm0, %v1981_v0 }
 0x3ad   : > { %v1170_v60 = vsel %vm555_vm4, %v1729_v59, 0.0  ;;  %v1183_v63 = vpack.c.bf16 %v1729_v59, %v1729_v59  ;;  %v1731_v2 = vpop.eup %1730 }
 0x3ae   : > { %1171 = vadd.xlane.f32.xlu1 %v1170_v60  ;;  %v1733_v3 = vpop.eup %1732  ;;  %v896_v13 = vmul.f32 %v1731_v2, %v895_v10 }
 0x3af   : > { %v1735_v4 = vpop.eup %1734  ;;  %v1033_v17 = vmul.f32 %v1733_v3, %v1032_v16 }
 0x3b0   : > { %v1169_v22 = vmul.f32 %v1735_v4, %v1168_v21  ;;  %v1737_v23 = vpop.eup %1736 }
 0x3b1   : > { %v760_v25 = vmul.f32 %v1737_v23, %v759_v5 }
 0x3b2   : > { %762 = vadd.xlane.f32.xlu1 %v761_v62 }
 0x3b3   : > { %1595 = vmatmul.mubr.msk.bf16.vlgmr.msra.gmra.mxu0 %vm694_vm3, %v1183_v63 }
 0x3bc   : > { %906 = vperm.xlu0 %1715, %v1731_v2  }
 0x3c3   : > { %1043 = vperm.xlu1 %1714, %v1733_v3  }
 0x3c7   : > { %1179 = vperm.xlu1 %1714, %v1735_v4  }
 0x3e6   : > { %v2359_v0 = vpop.f32.mrf.mxu0 }
 0x3e8   : > { %v1560_v6 = vpop.f32.mrf.mxu0 }
 0x3ea   : > { %v819_v7 = vpop.f32.mrf.mxu0 }
 0x3ec   : > { %v1561_v8 = vpop.f32.mrf.mxu0 }
 0x427   : > { %v899_v14 = vpop.xlane.xlu1 %898 }
 0x428   : > { %v900_v15 = vadd.f32 %v899_v14, %v896_v13 }
 0x42a   : > { %901 = vst.msk [vmem:[#allocation4 + $0x4] sm:$0xf] %vm546_vm5, %v900_v15 }
 0x42f   : > { %v1036_v18 = vpop.xlane.xlu0 %1035 }
 0x430   : > { %v1037_v19 = vadd.f32 %v1036_v18, %v1033_v17  ;;  %v1291_v17 = vld [vmem:[#allocation6] sm:$0xf] }
 0x431   : > { %v1248_v20 = vld [vmem:[#allocation4 + $0x4] sm:$0xf] }
 0x432   : > { %1038 = vst.msk [vmem:[#allocation4 + $0x8] sm:$0xf] %vm546_vm5, %v1037_v19  ;;  %1738 = vrcp.f32 %v1248_v20 }
 0x437   : > { %v1172_v24 = vpop.xlane.xlu1 %1171  ;;  %v907_v35 = vpop.permute.xlu0 %906 }
 0x438   : > { %v1173_v9 = vadd.f32 %v1172_v24, %v1169_v22  ;;  %v909_v36 = vmul.f32 %v907_v35, %v903_v34 }
 0x439   : > { %v1257_v11 = vld [vmem:[#allocation4 + $0x8] sm:$0xf] }
 0x43a   : > { %1174 = vst.msk [vmem:[#allocation4 + $0xc] sm:$0xf] %vm546_vm5, %v1173_v9  ;;  %1740 = vrcp.f32 %v1257_v11 }
 0x43b   : > { %v763_v26 = vpop.xlane.xlu1 %762 }
 0x43c   : > { %v764_v27 = vadd.f32 %v763_v26, %v760_v25 }
 0x43e   : > { %766 = vst.msk [vmem:[#allocation4] sm:$0xf] %vm546_vm5, %v764_v27 }
 0x43f   : > { %v1739_v28 = vpop.eup %1738  ;;  %v1044_v41 = vpop.permute.xlu1 %1043 }
 0x440   : > { %1252 = vperm.xlu0 %1715, %v1739_v28   ;;  %v1046_v44 = vmul.f32 %v1044_v41, %v1040_v40  ;;  %v1495_v28 = vld [vmem:[%s2433_s8] ss:$0 sm:$0xff] }
 0x441   : > { %v1266_v29 = vld [vmem:[#allocation4 + $0xc] sm:$0xf] }
 0x442   : > { %1742 = vrcp.f32 %v1266_v29 }
 0x443   : > { %v1180_v49 = vpop.permute.xlu1 %1179 }
 0x444   : > { %v1182_v52 = vmul.f32 %v1180_v49, %v1176_v48 }
 0x445   : > { %v1239_v30 = vld [vmem:[#allocation4] sm:$0xf] }
 0x446   : > { %1744 = vrcp.f32 %v1239_v30  ;;  %v1496_v30 = vld [vmem:[%s2434_s9] ss:$0 sm:$0xff] }
 0x447   : > { %v1741_v31 = vpop.eup %1740 }
 0x448   : > { %1261 = vperm.xlu1 %1714, %v1741_v31  }
 0x44c   : > { %770 = vperm.xlu1 %1714, %v1737_v23  }
 0x44f   : > { %v1743_v32 = vpop.eup %1742 }
 0x450   : > { %1270 = vperm.xlu0 %1715, %v1743_v32  }
 0x453   : > { %v1745_v33 = vpop.eup %1744 }
 0x454   : > { %1243 = vperm.xlu0 %1715, %v1745_v33  }
 0x463   : > { %v954_v37 = vpop.f32.mrf.mxu0 }
 0x464   : > { %v960_v38 = vadd.f32 %v954_v37, %v909_v36 }
 0x465   : > { %v1572_v39 = vpop.f32.mrf.mxu0 }
 0x466   : > { %961 = vst.msk [vmem:[#allocation5 + $0x4] sm:$0xf] %vm555_vm4, %v960_v38 }
 0x467   : > { %v957_v42 = vpop.f32.mrf.mxu0 }
 0x469   : > { %v1573_v43 = vpop.f32.mrf.mxu0 }
 0x46b   : > { %v1090_v45 = vpop.f32.mrf.mxu0 }
 0x46c   : > { %v1096_v46 = vadd.f32 %v1090_v45, %v1046_v44 }
 0x46d   : > { %v1584_v47 = vpop.f32.mrf.mxu0  ;;  %v1247_v59 = vld [vmem:[#allocation5 + $0x4] sm:$0xf] }
 0x46e   : > { %1097 = vst.msk [vmem:[#allocation5 + $0x8] sm:$0xf] %vm555_vm4, %v1096_v46 }
 0x46f   : > { %v1093_v50 = vpop.f32.mrf.mxu0 }
 0x471   : > { %v1585_v51 = vpop.f32.mrf.mxu0 }
 0x473   : > { %v1226_v53 = vpop.f32.mrf.mxu0 }
 0x474   : > { %v1232_v54 = vadd.f32 %v1226_v53, %v1182_v52 }
 0x475   : > { %v1596_v55 = vpop.f32.mrf.mxu0  ;;  %v1256_v62 = vld [vmem:[#allocation5 + $0x8] sm:$0xf] }
 0x476   : > { %1233 = vst.msk [vmem:[#allocation5 + $0xc] sm:$0xf] %vm555_vm4, %v1232_v54 }
 0x477   : > { %v1229_v56 = vpop.f32.mrf.mxu0 }
 0x479   : > { %v1597_v57 = vpop.f32.mrf.mxu0 }
 0x47d   : > { %v1265_v7 = vld [vmem:[#allocation5 + $0xc] sm:$0xf] }
 0x4bb   : > { %v1253_v58 = vpop.permute.xlu0 %1252 }
 0x4bc   : > { %v1255_v60 = vmul.f32 %v1253_v58, %v1247_v59 }
 0x4be   : > { %1275 = vrot.lane.b32.xlu1 %v1255_v60, %s1989_s30  ;;  %s1992_s30 = smov [#allocation15]  }
 0x4bf   : > { %s1884_s16 = sshll.u32 %s1992_s30, 4  ;;  %s1885_s16 = int_to_ptr.vmem [resolvable:$false] %s1884_s16 }
 0x4c0   : > { %s1886_s17 = scalar_lea.vmem %s1885_s16, 128  ;;  %p1887_p9 = scmp.lt.s32.totalorder %s1340_s29, %s1885_s16 }
 0x4c1   : > { %p1888_p0 = scmp.lt.s32.totalorder %s1886_s17, %s1880_s26 }
 0x4c3   : > { %v1262_v61 = vpop.permute.xlu1 %1261  ;;  %p1889_p3 = por %p1888_p0, %p1887_p9 }
 0x4c4   : > { %v1264_v63 = vmul.f32 %v1262_v61, %v1256_v62 }
 0x4c5   : > { %p1890_p6 = pnand %p1889_p3, %p1883_p12 }
 0x4c6   : > { %1279 = vrot.lane.b32.xlu0 %v1264_v63, %s1990_s23 }
 0x4c7   : > { %v771_v2 = vpop.permute.xlu1 %770 }
 0x4c8   : > { %v773_v3 = vmul.f32 %v771_v2, %v767_v1 }
 0x4ca   : > { %v822_v4 = vadd.f32 %v2359_v0, %v773_v3 }
 0x4cb   : > { %v1271_v6 = vpop.permute.xlu0 %1270 }
 0x4cc   : > { %823 = vst.msk [vmem:[#allocation5] sm:$0xf] %vm555_vm4, %v822_v4  ;;  %v1273_v8 = vmul.f32 %v1271_v6, %v1265_v7 }
 0x4ce   : > { %1283 = vrot.lane.b32.xlu1 %v1273_v8, %s1991_s2 }
 0x4cf   : > { %v1244_v10 = vpop.permute.xlu0 %1243 }
 0x4d3   : > { %v1238_v12 = vld [vmem:[#allocation5] sm:$0xf] }
 0x4d4   : > { %v1246_v14 = vmul.f32 %v1244_v10, %v1238_v12 }
 0x530   : > { %v1276_v13 = vpop.permute.xlu1 %1275 }
 0x531   : > { %v1286_v16 = vsel %vm694_vm3, %v1246_v14, %v1276_v13 }
 0x538   : > { %v1280_v15 = vpop.permute.xlu0 %1279 }
 0x539   : > { %v1288_v18 = vsel %vm1287_vm7, %v1286_v16, %v1280_v15 }
 0x540   : > { %v1284_v19 = vpop.permute.xlu1 %1283 }
 0x541   : > { %v1290_v0 = vsel %vm1289_vm8, %v1288_v18, %v1284_v19 }
 0x542   : > { %v1292_v20 = vadd.f32 %v1291_v17, %v1290_v0 }
 0x544   : > { %v1294_v21 = vsel %vm1293_vm9, %v1292_v20, 0.0 }
 0x545   : > { %1295 = vadd.xlane.f32.xlu0 %v1294_v21 }
 0x5ce   : > { %v1296_v22 = vpop.xlane.xlu0 %1295 }
 0x5cf   : > { %v1298_v23 = vmul.f32 0.03125, %v1296_v22 }
 0x5d1   : > { %v1299_v24 = vsub.f32 %v1292_v20, %v1298_v23 }
 0x5d3   : > { %v1300_v5 = vmul.f32 %v1299_v24, %v1299_v24 }
 0x5d5   : > { %v1301_v9 = vsel %vm1293_vm9, %v1300_v5, 0.0 }
 0x5d6   : > { %1302 = vadd.xlane.f32.xlu1 %v1301_v9 }
 0x65f   : > { %v1303_v11 = vpop.xlane.xlu1 %1302 }
 0x660   : > { %v1304_v25 = vmul.f32 0.03125, %v1303_v11 }
 0x662   : > { %v1305_v26 = vadd.f32 1e-05, %v1304_v25 }
 0x664   : > { %1746 = vrsqrt.f32 %v1305_v26 }
 0x671   : > { %v1747_v27 = vpop.eup %1746 }
 0x672   : > { %v1307_v29 = vmul.f32 %v1747_v27, %v1299_v24 }
 0x674   : > { %v1315_v31 = vmul.f32 %v1495_v28, %v1307_v29 }
 0x676   : > { %v1323_v32 = vadd.f32 %v1496_v30, %v1315_v31 }
 0x678   : > { %1324 = vst.msk [vmem:[%s445_s11] sm:$0xf] %vm1293_vm9, %v1323_v32 }
 0x679   : > { %1893 = shalt.err (!%p1890_p6)
}
 0x67a   : > { %s1894_s23 = scalar_lea.hbm %s1337_s20, 64  ;;  %s1898_s0 = scalar_lea.hbm %s2435_s10, 128 }
 0x67b   : > { %p1895_p2 = scmp.ne.s32.totalorder %s1337_s20, %s1894_s23  ;;  %p1899_p5 = scmp.lt.s32.totalorder %s1337_s20, %s2435_s10 }
 0x67c   : > { %p1900_p8 = scmp.lt.s32.totalorder %s1898_s0, %s1894_s23 }
 0x67d   : > { %p1896_p4 = pnand %p1895_p2, %p2172_p13 }
 0x67e   : > { %p1901_p7 = por %p1900_p8, %p1899_p5 }
 0x67f   : > { %p1897_p1 = pneg %p1896_p4 }
 0x681   : > { %p1902_p11 = pnand %p1901_p7, %p1897_p1 }
 0x683   : > { %1905 = shalt.err (!%p1902_p11)
}
 0x684   : > { %1616 = dma.vmem_to_hbm [thread:$0]  (%p2172_p13), %s1340_s29, 64, %s1337_s20, %s1326_s25  }
 0x685 PF: > { %s1351_s21 = sand.u32 1, %s1952_s13   ;;  %p2465_p12 = scmp.ge.s32.totalorder %s1972_s18, 2 }
 0x686   : > { %s1352_s22 = scalar_lea.sflag [#allocation8], %s1351_s21 }
 0x687   : > { %p1636_p9 = pnand %p2465_p12, %p2181_p10 }
 0x689   : > { %p1637_p0 = pneg %p1636_p9 }
 0x68b   : > { %1947 = dma.done.wait (%p1637_p0), %s1352_s22, 64  }
 0x68c   : > { %1949 = vsyncadd (%p1637_p0), %s1352_s22, 4294967232  ;;  %s28_s18 = sadd.s32 1, %s1972_s18   ;;  %s2466_s11 = sld [smem:[#allocation23_spill]] }
 0x68d   : > { %p25_p3 = scmp.ge.s32.totalorder %s28_s18, 4   ;;  %s2467_s16 = sld [smem:[#allocation21_spill]] }
 0x68e   : > { %s2468_s17 = sld [smem:[#allocation22_spill]]  ;;  %s2469_s13 = smov %s1956_s14 }
 0x68f   : > { %s2470_s14 = smov %s1960_s15  ;;  %27 = sbr.rel (!%p25_p3) target bundleno = 13 (0xd), region = 145 }
 0x692   : > { %s2471_s15 = smov %s2466_s11 }
 0x694   :  { %1357 = vsyncpa [#allocation7], 1 }
 0x695   :  { %1359 = vsyncpa [#allocation7 + $0x1], 1 }
 0x696   :  { %1360 = vsyncpa [#allocation10], 1 }
 0x697   :  { %1362 = vsyncpa [#allocation10 + $0x1], 1 }
 0x698   :  { %1363 = vsyncpa [#allocation13], 1 }
 0x699   :  { %1364 = vsyncpa [#allocation8], 1 }
 0x69a   :  { %1366 = vsyncpa [#allocation8 + $0x1], 1 }

</bundles_post_ra>
